<compile_context>
chip_gen: v5e
topology: v5e:2x2
jax: 0.10.0
libtpu: 0.0.40
codegen_flags: <defaults>
</compile_context>

<pallas_src>
import jax
import jax.numpy as jnp
from jax import lax
from jax.experimental import pallas as pl
from jax.experimental.pallas import tpu as pltpu

D_IN = 1000
H1, H2, H3 = 512, 256, 128
BN_EPS = 1e-5  # PyTorch BatchNorm1d default


# ----------------------------------------------------------------------------
# Kernel: fused 4-layer MLP (BN folded, dropout = identity at inference)
# ----------------------------------------------------------------------------
def mlp_kernel(x_ref,
               w1_ref, t1_ref,
               w2_ref, t2_ref,
               w3_ref, t3_ref,
               w4_ref, b4_ref,
               o_ref):
    # Layer 1: fc1 with BN1 scale folded into w1; bias + BN shift folded into t1.
    # x is already bf16 (cast in the wrapper) -> no in-kernel pack.
    h = jnp.dot(x_ref[...], w1_ref[...], preferred_element_type=jnp.float32)
    h = jnp.maximum(h + t1_ref[...], 0.0)
    # Layer 2
    h = jnp.dot(h.astype(jnp.bfloat16), w2_ref[...],
                preferred_element_type=jnp.float32)
    h = jnp.maximum(h + t2_ref[...], 0.0)
    # Layer 3
    h = jnp.dot(h.astype(jnp.bfloat16), w3_ref[...],
                preferred_element_type=jnp.float32)
    h = jnp.maximum(h + t3_ref[...], 0.0)
    # Layer 4: (1,128) x (tb,128)^T -> (1, tb) lane-dense row (trans-B matmul),
    # stored unmasked instead of a (tb,1) column of masked partial stores.
    y = lax.dot_general(w4_ref[...], h.astype(jnp.bfloat16),
                        (((1,), (1,)), ((), ())),
                        preferred_element_type=jnp.float32)
    o_ref[...] = (y + b4_ref[...]).reshape(o_ref.shape)


# ----------------------------------------------------------------------------
# Wrapper
# ----------------------------------------------------------------------------
def _round_up(x, m):
    return (x + m - 1) // m * m


def _cdiv(a, b):
    return (a + b - 1) // b


def robust_gap_predictor_forward(x, folded_params, *, block_b=512):
    """x: (B, input_size) float32. Returns (B, 1) float32."""
    B = x.shape[0]
    w1, t1, w2, t2, w3, t3, w4r, b4 = folded_params
    d_in = w1.shape[0]
    assert x.shape[1] == d_in

    # Batch tiling: keep padding waste small (<= 16*num_tiles rows) and make
    # sure there are >= 2 grid steps for B > 64 so both v7x TensorCores get
    # work (v5e/v6e are single-TC and unaffected).
    num_tiles = max(_cdiv(B, block_b), 1)
    if B > 64:
        num_tiles = max(num_tiles, 2)
    tb = _round_up(_cdiv(B, num_tiles), 16)   # bf16 sublane packing
    b_pad = num_tiles * tb

    # Single wrapper op: bf16 cast + batch pad.  No contraction-dim padding and
    # no fp32 round-trip through HBM.
    x_p = jnp.pad(x.astype(jnp.bfloat16), ((0, b_pad - B), (0, 0)))

    def const_spec(shape):    # weights: same block every grid step (VMEM-resident)
        return pl.BlockSpec(shape, lambda i: (0, 0))

    out = pl.pallas_call(
        mlp_kernel,
        out_shape=jax.ShapeDtypeStruct((num_tiles, 1, tb), jnp.float32),
        grid=(num_tiles,),
        in_specs=[
            pl.BlockSpec((tb, d_in), lambda i: (i, 0)),
            const_spec(w1.shape), const_spec(t1.shape),
            const_spec(w2.shape), const_spec(t2.shape),
            const_spec(w3.shape), const_spec(t3.shape),
            const_spec(w4r.shape), const_spec(b4.shape),
        ],
        out_specs=pl.BlockSpec((1, 1, tb), lambda i: (i, 0, 0)),
        compiler_params=pltpu.CompilerParams(
            # Batch tiles are independent -> shard across cores where available.
            dimension_semantics=("parallel",),
            vmem_limit_bytes=32 << 20,
        ),
    )(x_p, w1, t1, w2, t2, w3, t3, w4r, b4)
    return out.reshape(b_pad, 1)[:B]


# ----------------------------------------------------------------------------
# Parameters: raw (PyTorch-style) and folded/bf16 for the kernel
# ----------------------------------------------------------------------------
def make_raw_params(key, input_size=D_IN):
    """Deterministic synthetic PyTorch-style parameters."""
    dims = [(input_size, H1), (H1, H2), (H2, H3), (H3, 1)]
    keys = jax.random.split(key, 24)
    ki = iter(range(24))

    def linear(d_in, d_out):
        w = 0.05 * jax.random.normal(keys[next(ki)], (d_in, d_out), jnp.float32)
        b = 0.05 * jax.random.normal(keys[next(ki)], (d_out,), jnp.float32)
        return w, b

    def bn(d):
        gamma = 1.0 + 0.1 * jax.random.normal(keys[next(ki)], (d,), jnp.float32)
        beta = 0.1 * jax.random.normal(keys[next(ki)], (d,), jnp.float32)
        mean = 0.1 * jax.random.normal(keys[next(ki)], (d,), jnp.float32)
        var = jnp.abs(jax.random.normal(keys[next(ki)], (d,), jnp.float32)) + 0.5
        return gamma, beta, mean, var

    layers = []
    for li, (d_in, d_out) in enumerate(dims):
        w, b = linear(d_in, d_out)
        if li < 3:
            layers.append((w, b) + bn(d_out))
        else:
            layers.append((w, b))
    return layers


def fold_params(raw, *, weight_dtype=jnp.bfloat16):
    """Offline transform: fold eval-mode BN into weights, cast weights to bf16."""
    def fold(w, b, gamma, beta, mean, var):
        s = gamma / jnp.sqrt(var + BN_EPS)          # BN scale
        t = b * s + (beta - mean * s)               # BN shift + absorbed bias
        return (w * s).astype(weight_dtype), t.reshape(1, -1).astype(jnp.float32)

    (w1, b1, g1, be1, m1, v1), (w2, b2, g2, be2, m2, v2), \
        (w3, b3, g3, be3, m3, v3), (w4, b4) = raw

    w1f, t1 = fold(w1, b1, g1, be1, m1, v1)
    w2f, t2 = fold(w2, b2, g2, be2, m2, v2)
    w3f, t3 = fold(w3, b3, g3, be3, m3, v3)
    # Final layer as a bf16 row (lane-dense epilogue) + f32 bias.
    w4r = w4.reshape(1, -1).astype(weight_dtype)
    b4r = b4.reshape(1, 1).astype(jnp.float32)
    return (w1f, t1, w2f, t2, w3f, t3, w4r, b4r)


# ----------------------------------------------------------------------------
# References
# ----------------------------------------------------------------------------
def reference_forward_fp32(x, raw):
    """Exact fp32 PyTorch-semantics eval forward (BN with running stats)."""
    (w1, b1, g1, be1, m1, v1), (w2, b2, g2, be2, m2, v2), \
        (w3, b3, g3, be3, m3, v3), (w4, b4) = raw

    def layer(h, w, b, g, be, m, v):
        h = h @ w + b
        h = (h - m) / jnp.sqrt(v + BN_EPS) * g + be
        return jnp.maximum(h, 0.0)

    h = layer(x, w1, b1, g1, be1, m1, v1)
    h = layer(h, w2, b2, g2, be2, m2, v2)
    h = layer(h, w3, b3, g3, be3, m3, v3)
    return h @ w4 + b4


def reference_forward_folded(x, fp):
    """Same math as the kernel (bf16 input/weights, fp32 accumulate), plain JAX."""
    w1, t1, w2, t2, w3, t3, w4r, b4 = fp
    xb = x.astype(jnp.bfloat16)
    h = jnp.maximum(jnp.dot(xb, w1, preferred_element_type=jnp.float32) + t1, 0.0)
    h = jnp.maximum(jnp.dot(h.astype(jnp.bfloat16), w2,
                            preferred_element_type=jnp.float32) + t2, 0.0)
    h = jnp.maximum(jnp.dot(h.astype(jnp.bfloat16), w3,
                            preferred_element_type=jnp.float32) + t3, 0.0)
    return jnp.dot(h.astype(jnp.bfloat16), w4r.T,
                   preferred_element_type=jnp.float32) + b4


if __name__ == "__main__":
    key = jax.random.PRNGKey(0)
    k_x, k_p = jax.random.split(key)

    raw_params = make_raw_params(k_p, input_size=D_IN)
    folded = fold_params(raw_params)

    # Small batch (single grid step).
    B = 8
    x = jax.random.normal(k_x, (B, D_IN), jnp.float32)
    y = jax.block_until_ready(robust_gap_predictor_forward(x, folded))
    assert y.shape == (B, 1)
    # Kernel-exact check (same bf16 input/weights, same accumulate dtype).
    assert jnp.allclose(y, reference_forward_folded(x, folded), atol=1e-2, rtol=1e-2)
    # Loose check against the exact fp32 PyTorch-semantics forward
    # (bf16 input + weight quantization introduces ~1e-2 relative error).
    assert jnp.allclose(y, reference_forward_fp32(x, raw_params), atol=1e-1, rtol=1e-1)

    # Larger non-aligned batch: exercises multi-tile grid + short-tile padding.
    B2 = 200
    x2 = jax.random.normal(k_x, (B2, D_IN), jnp.float32)
    y2 = jax.block_until_ready(robust_gap_predictor_forward(x2, folded))
    assert y2.shape == (B2, 1)
    assert jnp.allclose(y2, reference_forward_folded(x2, folded), atol=1e-2, rtol=1e-2)
    assert jnp.allclose(y2, reference_forward_fp32(x2, raw_params), atol=1e-1, rtol=1e-1)

    print("KERNEL_OK")
</pallas_src>

<mosaic_0001>
module attributes {stable_mosaic.version = 11 : i64} {
  func.func @mlp_kernel(%arg0: i32, %arg1: memref<16x1000xbf16, #tpu.memory_space<vmem>>, %arg2: memref<1000x512xbf16, #tpu.memory_space<vmem>>, %arg3: memref<1x512xf32, #tpu.memory_space<vmem>>, %arg4: memref<512x256xbf16, #tpu.memory_space<vmem>>, %arg5: memref<1x256xf32, #tpu.memory_space<vmem>>, %arg6: memref<256x128xbf16, #tpu.memory_space<vmem>>, %arg7: memref<1x128xf32, #tpu.memory_space<vmem>>, %arg8: memref<1x128xbf16, #tpu.memory_space<vmem>>, %arg9: memref<1x1xf32, #tpu.memory_space<vmem>>, %arg10: memref<1x1x16xf32, #tpu.memory_space<vmem>>) attributes {dimension_semantics = [#tpu.dimension_semantics<parallel>], iteration_bounds = array<i64: 1>, scalar_prefetch = 0 : i64, scratch_operands = 0 : i64, tpu.core_type = #tpu.core_type<tc>, window_params = [{transform_indices = @transform_0, window_bounds = array<i64: 16, 1000>}, {pipeline_mode = #tpu.pipeline_mode<synchronous>, transform_indices = @transform_1, window_bounds = array<i64: 1000, 512>}, {pipeline_mode = #tpu.pipeline_mode<synchronous>, transform_indices = @transform_2, window_bounds = array<i64: 1, 512>}, {pipeline_mode = #tpu.pipeline_mode<synchronous>, transform_indices = @transform_3, window_bounds = array<i64: 512, 256>}, {pipeline_mode = #tpu.pipeline_mode<synchronous>, transform_indices = @transform_4, window_bounds = array<i64: 1, 256>}, {pipeline_mode = #tpu.pipeline_mode<synchronous>, transform_indices = @transform_5, window_bounds = array<i64: 256, 128>}, {pipeline_mode = #tpu.pipeline_mode<synchronous>, transform_indices = @transform_6, window_bounds = array<i64: 1, 128>}, {pipeline_mode = #tpu.pipeline_mode<synchronous>, transform_indices = @transform_7, window_bounds = array<i64: 1, 128>}, {pipeline_mode = #tpu.pipeline_mode<synchronous>, transform_indices = @transform_8, window_bounds = array<i64: 1, 1>}, {transform_indices = @transform_9, window_bounds = array<i64: 1, 1, 16>}]} {
    %c0 = arith.constant 0 : index
    %c0_0 = arith.constant 0 : index
    %0 = vector.load %arg1[%c0, %c0_0] : memref<16x1000xbf16, #tpu.memory_space<vmem>>, vector<16x1000xbf16>
    %c0_1 = arith.constant 0 : index
    %c0_2 = arith.constant 0 : index
    %1 = vector.load %arg2[%c0_1, %c0_2] : memref<1000x512xbf16, #tpu.memory_space<vmem>>, vector<1000x512xbf16>
    %cst = arith.constant dense<0.000000e+00> : vector<16x512xf32>
    %2 = tpu.matmul %0, %1, %cst {dimension_numbers = #tpu.dot_dimension_numbers<[1], [0], [0], [1], [0, 0, 1, 1], [], []>} : vector<16x1000xbf16>, vector<1000x512xbf16>, vector<16x512xf32> -> vector<16x512xf32>
    %c0_3 = arith.constant 0 : index
    %c0_4 = arith.constant 0 : index
    %3 = vector.load %arg3[%c0_3, %c0_4] : memref<1x512xf32, #tpu.memory_space<vmem>>, vector<1x512xf32>
    %4 = vector.broadcast %3 : vector<1x512xf32> to vector<16x512xf32>
    %5 = arith.addf %2, %4 : vector<16x512xf32>
    %cst_5 = arith.constant 0.000000e+00 : f32
    %6 = vector.broadcast %cst_5 : f32 to vector<16x512xf32>
    %7 = arith.maximumf %5, %6 : vector<16x512xf32>
    %8 = arith.truncf %7 : vector<16x512xf32> to vector<16x512xbf16>
    %c0_6 = arith.constant 0 : index
    %c0_7 = arith.constant 0 : index
    %9 = vector.load %arg4[%c0_6, %c0_7] : memref<512x256xbf16, #tpu.memory_space<vmem>>, vector<512x256xbf16>
    %cst_8 = arith.constant dense<0.000000e+00> : vector<16x256xf32>
    %10 = tpu.matmul %8, %9, %cst_8 {dimension_numbers = #tpu.dot_dimension_numbers<[1], [0], [0], [1], [0, 0, 1, 1], [], []>} : vector<16x512xbf16>, vector<512x256xbf16>, vector<16x256xf32> -> vector<16x256xf32>
    %c0_9 = arith.constant 0 : index
    %c0_10 = arith.constant 0 : index
    %11 = vector.load %arg5[%c0_9, %c0_10] : memref<1x256xf32, #tpu.memory_space<vmem>>, vector<1x256xf32>
    %12 = vector.broadcast %11 : vector<1x256xf32> to vector<16x256xf32>
    %13 = arith.addf %10, %12 : vector<16x256xf32>
    %cst_11 = arith.constant 0.000000e+00 : f32
    %14 = vector.broadcast %cst_11 : f32 to vector<16x256xf32>
    %15 = arith.maximumf %13, %14 : vector<16x256xf32>
    %16 = arith.truncf %15 : vector<16x256xf32> to vector<16x256xbf16>
    %c0_12 = arith.constant 0 : index
    %c0_13 = arith.constant 0 : index
    %17 = vector.load %arg6[%c0_12, %c0_13] : memref<256x128xbf16, #tpu.memory_space<vmem>>, vector<256x128xbf16>
    %cst_14 = arith.constant dense<0.000000e+00> : vector<16x128xf32>
    %18 = tpu.matmul %16, %17, %cst_14 {dimension_numbers = #tpu.dot_dimension_numbers<[1], [0], [0], [1], [0, 0, 1, 1], [], []>} : vector<16x256xbf16>, vector<256x128xbf16>, vector<16x128xf32> -> vector<16x128xf32>
    %c0_15 = arith.constant 0 : index
    %c0_16 = arith.constant 0 : index
    %19 = vector.load %arg7[%c0_15, %c0_16] : memref<1x128xf32, #tpu.memory_space<vmem>>, vector<1x128xf32>
    %20 = vector.broadcast %19 : vector<1x128xf32> to vector<16x128xf32>
    %21 = arith.addf %18, %20 : vector<16x128xf32>
    %cst_17 = arith.constant 0.000000e+00 : f32
    %22 = vector.broadcast %cst_17 : f32 to vector<16x128xf32>
    %23 = arith.maximumf %21, %22 : vector<16x128xf32>
    %c0_18 = arith.constant 0 : index
    %c0_19 = arith.constant 0 : index
    %24 = vector.load %arg8[%c0_18, %c0_19] : memref<1x128xbf16, #tpu.memory_space<vmem>>, vector<1x128xbf16>
    %25 = arith.truncf %23 : vector<16x128xf32> to vector<16x128xbf16>
    %cst_20 = arith.constant dense<0.000000e+00> : vector<1x16xf32>
    %26 = tpu.matmul %24, %25, %cst_20 {dimension_numbers = #tpu.dot_dimension_numbers<[1], [1], [0], [0], [0, 0, 1, 0], [], []>} : vector<1x128xbf16>, vector<16x128xbf16>, vector<1x16xf32> -> vector<1x16xf32>
    %c0_21 = arith.constant 0 : index
    %c0_22 = arith.constant 0 : index
    %27 = vector.load %arg9[%c0_21, %c0_22] : memref<1x1xf32, #tpu.memory_space<vmem>>, vector<1x1xf32>
    %28 = vector.broadcast %27 : vector<1x1xf32> to vector<1x16xf32>
    %29 = arith.addf %26, %28 : vector<1x16xf32>
    %30 = vector.shape_cast %29 : vector<1x16xf32> to vector<1x1x16xf32>
    %c0_23 = arith.constant 0 : index
    %c0_24 = arith.constant 0 : index
    %c0_25 = arith.constant 0 : index
    %31 = vector.load %arg10[%c0_23, %c0_24, %c0_25] : memref<1x1x16xf32, #tpu.memory_space<vmem>>, vector<1x1x16xf32>
    tpu.vector_store %arg10[%c0_23, %c0_24, %c0_25], %30 {strides = array<i32>} : memref<1x1x16xf32, #tpu.memory_space<vmem>>, vector<1x1x16xf32>,
    return
  }
  func.func @transform_0(%arg0: i32) -> (i32, i32) {
    %c0_i32 = arith.constant 0 : i32
    %c0_i32_0 = arith.constant 0 : i32
    return %arg0, %c0_i32 : i32, i32
  }
  func.func @transform_1(%arg0: i32) -> (i32, i32) {
    %c0_i32 = arith.constant 0 : i32
    %c0_i32_0 = arith.constant 0 : i32
    %c0_i32_1 = arith.constant 0 : i32
    return %c0_i32, %c0_i32_0 : i32, i32
  }
  func.func @transform_2(%arg0: i32) -> (i32, i32) {
    %c0_i32 = arith.constant 0 : i32
    %c0_i32_0 = arith.constant 0 : i32
    %c0_i32_1 = arith.constant 0 : i32
    return %c0_i32, %c0_i32_0 : i32, i32
  }
  func.func @transform_3(%arg0: i32) -> (i32, i32) {
    %c0_i32 = arith.constant 0 : i32
    %c0_i32_0 = arith.constant 0 : i32
    %c0_i32_1 = arith.constant 0 : i32
    return %c0_i32, %c0_i32_0 : i32, i32
  }
  func.func @transform_4(%arg0: i32) -> (i32, i32) {
    %c0_i32 = arith.constant 0 : i32
    %c0_i32_0 = arith.constant 0 : i32
    %c0_i32_1 = arith.constant 0 : i32
    return %c0_i32, %c0_i32_0 : i32, i32
  }
  func.func @transform_5(%arg0: i32) -> (i32, i32) {
    %c0_i32 = arith.constant 0 : i32
    %c0_i32_0 = arith.constant 0 : i32
    %c0_i32_1 = arith.constant 0 : i32
    return %c0_i32, %c0_i32_0 : i32, i32
  }
  func.func @transform_6(%arg0: i32) -> (i32, i32) {
    %c0_i32 = arith.constant 0 : i32
    %c0_i32_0 = arith.constant 0 : i32
    %c0_i32_1 = arith.constant 0 : i32
    return %c0_i32, %c0_i32_0 : i32, i32
  }
  func.func @transform_7(%arg0: i32) -> (i32, i32) {
    %c0_i32 = arith.constant 0 : i32
    %c0_i32_0 = arith.constant 0 : i32
    %c0_i32_1 = arith.constant 0 : i32
    return %c0_i32, %c0_i32_0 : i32, i32
  }
  func.func @transform_8(%arg0: i32) -> (i32, i32) {
    %c0_i32 = arith.constant 0 : i32
    %c0_i32_0 = arith.constant 0 : i32
    %c0_i32_1 = arith.constant 0 : i32
    return %c0_i32, %c0_i32_0 : i32, i32
  }
  func.func @transform_9(%arg0: i32) -> (i32, i32, i32) {
    %c0_i32 = arith.constant 0 : i32
    %c0_i32_0 = arith.constant 0 : i32
    %c0_i32_1 = arith.constant 0 : i32
    return %arg0, %c0_i32, %c0_i32_0 : i32, i32, i32
  }
}

</mosaic_0001>

<bundles_post_ra>
// kernel: tpu_custom_call.1
= control target key start
LH: loop header
LB: loop body
LE: loop exit
PB: predicated region body
PF: predicated region fallthrough
CT: control target
= control target key end

     0   :  { %s4908_s0 = inlined_call_operand.hbm [shape: bf16[16,1000], index: 0, kind: input, shape index: {}]   ;;  %s4909_s1 = inlined_call_operand.hbm [shape: bf16[1000,512], index: 1, kind: input, shape index: {}]   ;;  %s4910_s2 = inlined_call_operand.hbm [shape: f32[1,512], index: 2, kind: input, shape index: {}]   ;;  %s4911_s3 = inlined_call_operand.hbm [shape: bf16[512,256], index: 3, kind: input, shape index: {}]   ;;  %s4912_s4 = inlined_call_operand.vmem [shape: f32[1,256], index: 4, kind: input, shape index: {}]   ;;  %s4913_s5 = inlined_call_operand.hbm [shape: bf16[256,128], index: 5, kind: input, shape index: {}]   ;;  %s4914_s6 = inlined_call_operand.vmem [shape: f32[1,128], index: 6, kind: input, shape index: {}]   ;;  %s4915_s7 = inlined_call_operand.vmem [shape: bf16[1,128], index: 7, kind: input, shape index: {}]   ;;  %s4916_s8 = inlined_call_operand.<no memory space> [shape: f32[1,1], index: 8, kind: input, shape index: {}]   ;;  %s4917_s9 = inlined_call_operand.hbm [shape: f32[1,1,16], index: 9, kind: output, shape index: {}]  }
   0x1   :  { %v14_v0 = vstv %s4916_s8 }
   0x2   :  { %15 = vst [vmem:[#allocation2] sm:$0x1] %v14_v0 }
   0x3   :  { %16 = vsyncpa [#allocation4], 0 }
   0x4   :  { %17 = vsyncpa [#allocation7], 0 }
   0x5   :  { %18 = vsyncpa [#allocation10], 0  ;;  %s37_s13 = sshll.u32 %s4909_s1, 4  ;;  %s38_s13 = int_to_ptr.hbm [resolvable:$true] %s37_s13 }
   0x6   :  { %19 = vsyncpa [#allocation5], 0  ;;  %s4713_s14 = smov [#allocation6]   ;;  %s61_s18 = sshll.u32 %s4911_s3, 4  ;;  %s62_s18 = int_to_ptr.hbm [resolvable:$true] %s61_s18 }
   0x7   :  { %s39_s15 = sshll.u32 %s4713_s14, 4  ;;  %s4714_s19 = smov 256   ;;  %s40_s15 = int_to_ptr.vmem [resolvable:$true] %s39_s15 }
   0x8   :  { %s4715_s20 = smov 16   ;;  %s4716_s8 = smov [#allocation9]  }
   0x9   :  { %45 = dma.hbm_to_vmem [thread:$0]  %s38_s13, 32000, %s40_s15, [#allocation7], %s4714_s19, %s4714_s19, %s4715_s20  }
   0xa   :  { %s63_s21 = sshll.u32 %s4716_s8, 4  ;;  %s4717_s22 = smov 128   ;;  %s64_s21 = int_to_ptr.vmem [resolvable:$true] %s63_s21 }
   0xb   :  { %s4718_s23 = smov 8   ;;  %s24_s25 = sshll.u32 %s4908_s0, 4  ;;  %s25_s25 = int_to_ptr.hbm [resolvable:$true] %s24_s25 }
   0xc   :  { %69 = dma.hbm_to_vmem [thread:$0]  %s62_s18, 8192, %s64_s21, [#allocation10], %s4717_s22, %s4717_s22, %s4718_s23  }
   0xd   :  { %s4719_s26 = smov [#allocation3]   ;;  %s51_s29 = sshll.u32 %s4910_s2, 4  ;;  %s52_s29 = int_to_ptr.hbm [resolvable:$true] %s51_s29 }
   0xe   :  { %s26_s27 = sshll.u32 %s4719_s26, 4  ;;  %s4720_s30 = smov 512   ;;  %s27_s27 = int_to_ptr.vmem [resolvable:$true] %s26_s27 }
   0xf   :  { %s4721_s10 = smov 32   ;;  %s4722_s11 = smov [#allocation8]  }
  0x10   :  { %32 = dma.hbm_to_vmem [thread:$0]  %s25_s25, 1024, %s27_s27, [#allocation4], %s4720_s30, %s4720_s30, %s4721_s10  }
  0x11   :  { %s53_s12 = sshll.u32 %s4722_s11, 4  ;;  %s76_s15 = sshll.u32 %s4913_s5, 4  ;;  %s54_s12 = int_to_ptr.vmem [resolvable:$true] %s53_s12  ;;  %s77_s15 = int_to_ptr.hbm [resolvable:$true] %s76_s15 }
  0x12   :  { %56 = dma.hbm_to_vmem [thread:$0]  %s52_s29, 64, %s54_s12, [#allocation7]  }
  0x13   :  { %s4723_s0 = smov [#allocation11]   ;;  %s4724_s17 = smov 64  }
  0x14   :  { %s78_s16 = sshll.u32 %s4723_s0, 4  ;;  %s4725_s18 = smov 4   ;;  %s79_s16 = int_to_ptr.vmem [resolvable:$true] %s78_s16 }
  0x15   :  { %84 = dma.hbm_to_vmem [thread:$0]  %s77_s15, 2048, %s79_s16, [#allocation10], %s4724_s17, %s4724_s17, %s4725_s18  }
  0x16   :  { %4705 = dma.done.wait [#allocation4], 1024  }
  0x17   :  { %4706 = vsyncadd [#allocation4], 4294966272 }
  0x18   :  { %4707 = dma.done.wait [#allocation7], 32064  }
  0x19   :  { %4708 = vsyncadd [#allocation7], 4294935232 }
  0x1a   :  { %4709 = dma.done.wait [#allocation10], 10240  }
  0x1b   :  { %4710 = vsyncadd [#allocation10], 4294957056  ;;  %v3005_v1 = vld [vmem:[#allocation6 + $0xe0] sm:$0xf]  ;;  %v4245_v2 = vld [vmem:[#allocation6 + $0xec] sm:$0xf0] }
  0x1c   :  { %v3133_v3 = vld [vmem:[#allocation6 + $0x1e0] sm:$0xf]  ;;  %v3006_v4 = vor.u32 %v4245_v2, %v3005_v1  ;;  %v4277_v5 = vld [vmem:[#allocation6 + $0x1ec] sm:$0xf0]  ;;  %vm1673_vm0 = vcmask 1043456   ;;  %vm1669_vm1 = vcmask 850944  }
  0x1d   :  { %v3261_v6 = vld [vmem:[#allocation6 + $0x2e0] sm:$0xf]  ;;  %v4309_v7 = vld [vmem:[#allocation6 + $0x2ec] sm:$0xf0]  ;;  %v3134_v8 = vor.u32 %v4277_v5, %v3133_v3  ;;  %s4727_s21 = smov [#allocation12]   ;;  %s2847_s1 = sshll.u32 %s4917_s9, 4  ;;  %s2848_s1 = int_to_ptr.hbm [resolvable:$true] %s2847_s1 }
  0x1e   :  { %v3262_v9 = vor.u32 %v4309_v7, %v3261_v6  ;;  %v3389_v10 = vld [vmem:[#allocation6 + $0x3e0] sm:$0xf]  ;;  %v4341_v11 = vld [vmem:[#allocation6 + $0x3ec] sm:$0xf0]  ;;  %1686 = vmatpush.bf16.msra.mxu0 %v3006_v4  ;;  %s2845_s22 = sshll.u32 %s4727_s21, 4  ;;  %vm2838_vm2 = vcmask 122880   ;;  %s2846_s22 = int_to_ptr.vmem [resolvable:$true] %s2845_s22 }
  0x1f   :  { %v2989_v12 = vld [vmem:[#allocation6 + $0xc0] sm:$0xf]  ;;  %v3390_v13 = vor.u32 %v4341_v11, %v3389_v10  ;;  %v4241_v14 = vld [vmem:[#allocation6 + $0xcc] sm:$0xf0]  ;;  %1700 = vmatpush.bf16.msra.mxu1 %v3134_v8 }
  0x20   :  { %v3117_v15 = vld [vmem:[#allocation6 + $0x1c0] sm:$0xf]  ;;  %v4273_v16 = vld [vmem:[#allocation6 + $0x1cc] sm:$0xf0]  ;;  %1714 = vmatpush.bf16.msra.mxu2 %v3262_v9  ;;  %v2990_v17 = vor.u32 %v4241_v14, %v2989_v12 }
  0x21   :  { %v3118_v18 = vor.u32 %v4273_v16, %v3117_v15  ;;  %v3245_v19 = vld [vmem:[#allocation6 + $0x2c0] sm:$0xf]  ;;  %v4305_v20 = vld [vmem:[#allocation6 + $0x2cc] sm:$0xf0]  ;;  %1728 = vmatpush.bf16.msra.mxu3 %v3390_v13 }
  0x22   :  { %v3373_v21 = vld [vmem:[#allocation6 + $0x3c0] sm:$0xf]  ;;  %v3246_v22 = vor.u32 %v4305_v20, %v3245_v19  ;;  %v4337_v23 = vld [vmem:[#allocation6 + $0x3cc] sm:$0xf0]  ;;  %1687 = vmatpush.bf16.msra.mxu0 %v2990_v17 }
  0x23   :  { %v2973_v24 = vld [vmem:[#allocation6 + $0xa0] sm:$0xf]  ;;  %v4237_v25 = vld [vmem:[#allocation6 + $0xac] sm:$0xf0]  ;;  %v3374_v26 = vor.u32 %v4337_v23, %v3373_v21  ;;  %1701 = vmatpush.bf16.msra.mxu1 %v3118_v18 }
  0x24   :  { %v3101_v27 = vld [vmem:[#allocation6 + $0x1a0] sm:$0xf]  ;;  %v4269_v28 = vld [vmem:[#allocation6 + $0x1ac] sm:$0xf0]  ;;  %v2974_v30 = vor.u32 %v4237_v25, %v2973_v24  ;;  %1715 = vmatpush.bf16.msra.mxu2 %v3246_v22 }
  0x25   :  { %v3229_v29 = vld [vmem:[#allocation6 + $0x2a0] sm:$0xf]  ;;  %v4301_v31 = vld [vmem:[#allocation6 + $0x2ac] sm:$0xf0]  ;;  %v3102_v34 = vor.u32 %v4269_v28, %v3101_v27  ;;  %1729 = vmatpush.bf16.msra.mxu3 %v3374_v26 }
  0x26   :  { %v3357_v32 = vld [vmem:[#allocation6 + $0x3a0] sm:$0xf]  ;;  %v4333_v33 = vld [vmem:[#allocation6 + $0x3ac] sm:$0xf0]  ;;  %v3230_v35 = vor.u32 %v4301_v31, %v3229_v29  ;;  %1688 = vmatpush.bf16.msra.mxu0 %v2974_v30 }
  0x27   :  { %v2957_v36 = vld [vmem:[#allocation6 + $0x80] sm:$0xf]  ;;  %v4233_v37 = vld [vmem:[#allocation6 + $0x8c] sm:$0xf0]  ;;  %v3358_v39 = vor.u32 %v4333_v33, %v3357_v32  ;;  %1702 = vmatpush.bf16.msra.mxu1 %v3102_v34 }
  0x28   :  { %v3085_v38 = vld [vmem:[#allocation6 + $0x180] sm:$0xf]  ;;  %v4265_v40 = vld [vmem:[#allocation6 + $0x18c] sm:$0xf0]  ;;  %v2958_v45 = vor.u32 %v4233_v37, %v2957_v36  ;;  %1716 = vmatpush.bf16.msra.mxu2 %v3230_v35 }
  0x29   :  { %v3213_v41 = vld [vmem:[#allocation6 + $0x280] sm:$0xf]  ;;  %v4297_v42 = vld [vmem:[#allocation6 + $0x28c] sm:$0xf0]  ;;  %v3086_v46 = vor.u32 %v4265_v40, %v3085_v38  ;;  %1730 = vmatpush.bf16.msra.mxu3 %v3358_v39 }
  0x2a   :  { %v3341_v43 = vld [vmem:[#allocation6 + $0x380] sm:$0xf]  ;;  %v4329_v44 = vld [vmem:[#allocation6 + $0x38c] sm:$0xf0]  ;;  %v3214_v47 = vor.u32 %v4297_v42, %v3213_v41  ;;  %1689 = vmatpush.bf16.msra.mxu0 %v2958_v45 }
  0x2b   :  { %v2941_v48 = vld [vmem:[#allocation6 + $0x60] sm:$0xf]  ;;  %v4229_v49 = vld [vmem:[#allocation6 + $0x6c] sm:$0xf0]  ;;  %v3342_v51 = vor.u32 %v4329_v44, %v3341_v43  ;;  %1703 = vmatpush.bf16.msra.mxu1 %v3086_v46 }
  0x2c   :  { %v3069_v50 = vld [vmem:[#allocation6 + $0x160] sm:$0xf]  ;;  %v4261_v52 = vld [vmem:[#allocation6 + $0x16c] sm:$0xf0]  ;;  %v2942_v57 = vor.u32 %v4229_v49, %v2941_v48  ;;  %1717 = vmatpush.bf16.msra.mxu2 %v3214_v47 }
  0x2d   :  { %v3197_v53 = vld [vmem:[#allocation6 + $0x260] sm:$0xf]  ;;  %v4293_v54 = vld [vmem:[#allocation6 + $0x26c] sm:$0xf0]  ;;  %v3070_v58 = vor.u32 %v4261_v52, %v3069_v50  ;;  %1731 = vmatpush.bf16.msra.mxu3 %v3342_v51 }
  0x2e   :  { %v3325_v55 = vld [vmem:[#allocation6 + $0x360] sm:$0xf]  ;;  %v4325_v56 = vld [vmem:[#allocation6 + $0x36c] sm:$0xf0]  ;;  %v3198_v59 = vor.u32 %v4293_v54, %v3197_v53  ;;  %1690 = vmatpush.bf16.msra.mxu0 %v2942_v57 }
  0x2f   :  { %v2925_v60 = vld [vmem:[#allocation6 + $0x40] sm:$0xf]  ;;  %v4225_v61 = vld [vmem:[#allocation6 + $0x4c] sm:$0xf0]  ;;  %v3326_v63 = vor.u32 %v4325_v56, %v3325_v55  ;;  %1704 = vmatpush.bf16.msra.mxu1 %v3070_v58  ;;  %v2869_v56 = vld [vmem:[#allocation3 + $0x8] sm:$0xf] }
  0x30   :  { %v3053_v62 = vld [vmem:[#allocation6 + $0x140] sm:$0xf]  ;;  %v4257_v0 = vld [vmem:[#allocation6 + $0x14c] sm:$0xf0]  ;;  %v2926_v5 = vor.u32 %v4225_v61, %v2925_v60  ;;  %1718 = vmatpush.bf16.msra.mxu2 %v3198_v59  ;;  %v4212_v61 = vld [vmem:[#allocation3 + $0x24] sm:$0xf0] }
  0x31   :  { %v3181_v1 = vld [vmem:[#allocation6 + $0x240] sm:$0xf]  ;;  %v4289_v2 = vld [vmem:[#allocation6 + $0x24c] sm:$0xf0]  ;;  %v3054_v6 = vor.u32 %v4257_v0, %v3053_v62  ;;  %1732 = vmatpush.bf16.msra.mxu3 %v3326_v63 }
  0x32   :  { %v3309_v3 = vld [vmem:[#allocation6 + $0x340] sm:$0xf]  ;;  %v4321_v4 = vld [vmem:[#allocation6 + $0x34c] sm:$0xf0]  ;;  %v3182_v7 = vor.u32 %v4289_v2, %v3181_v1  ;;  %1691 = vmatpush.bf16.msra.mxu0 %v2926_v5 }
  0x33   :  { %v2909_v8 = vld [vmem:[#allocation6 + $0x20] sm:$0xf]  ;;  %v4221_v9 = vld [vmem:[#allocation6 + $0x2c] sm:$0xf0]  ;;  %v3310_v11 = vor.u32 %v4321_v4, %v3309_v3  ;;  %1705 = vmatpush.bf16.msra.mxu1 %v3054_v6  ;;  %v4802_v3 = vor.u32 %v4212_v61, %v2869_v56 }
  0x34   :  { %v3037_v10 = vld [vmem:[#allocation6 + $0x120] sm:$0xf]  ;;  %v4253_v12 = vld [vmem:[#allocation6 + $0x12c] sm:$0xf0]  ;;  %v2910_v17 = vor.u32 %v4221_v9, %v2909_v8  ;;  %1719 = vmatpush.bf16.msra.mxu2 %v3182_v7  ;;  %v4207_v8 = vld [vmem:[#allocation3 + $0x4] sm:$0xf] }
  0x35   :  { %v3165_v13 = vld [vmem:[#allocation6 + $0x220] sm:$0xf]  ;;  %v4285_v14 = vld [vmem:[#allocation6 + $0x22c] sm:$0xf0]  ;;  %v3038_v21 = vor.u32 %v4253_v12, %v3037_v10  ;;  %1733 = vmatpush.bf16.msra.mxu3 %v3310_v11  ;;  %v2863_v9 = vld [vmem:[#allocation3 + $0x20] sm:$0xf0] }
  0x36   :  { %v3293_v15 = vld [vmem:[#allocation6 + $0x320] sm:$0xf]  ;;  %v4317_v16 = vld [vmem:[#allocation6 + $0x32c] sm:$0xf0]  ;;  %v3166_v22 = vor.u32 %v4285_v14, %v3165_v13  ;;  %1692 = vmatpush.bf16.msra.mxu0 %v2910_v17  ;;  %v4208_v10 = vld [vmem:[#allocation3 + $0xc] sm:$0xf]  ;;  %v4806_v12 = vor.u32 %v4207_v8, %v2863_v9 }
  0x37   :  { %v2893_v18 = vld [vmem:[#allocation6] sm:$0xf]  ;;  %v4217_v19 = vld [vmem:[#allocation6 + $0xc] sm:$0xf0]  ;;  %v3294_v27 = vor.u32 %v4317_v16, %v3293_v15  ;;  %1706 = vmatpush.bf16.msra.mxu1 %v3038_v21  ;;  %v2871_v13 = vld [vmem:[#allocation3 + $0x28] sm:$0xf0] }
  0x38   :  { %v4796_v20 = vld [vmem:[#allocation6 + $0x7c0] sm:$0xff]  ;;  %v4249_v24 = vld [vmem:[#allocation6 + $0x10c] sm:$0xf0]  ;;  %v2894_v34 = vor.u32 %v4217_v19, %v2893_v18  ;;  %1720 = vmatpush.bf16.msra.mxu2 %v3166_v22  ;;  %v4808_v19 = vor.u32 %v4208_v10, %v2871_v13 }
  0x39   :  { %v3021_v23 = vld [vmem:[#allocation6 + $0x100] sm:$0xf]  ;;  %v1165_v26 = vunpack.c.l.b16 %v4796_v20  ;;  %v4281_v28 = vld [vmem:[#allocation6 + $0x20c] sm:$0xf0]  ;;  %1734 = vmatpush.bf16.msra.mxu3 %v3294_v27  ;;  %v4275_v13 = vld [vmem:[#allocation6 + $0x1e4] sm:$0xf] }
  0x3a   :  { %v3149_v25 = vld [vmem:[#allocation6 + $0x200] sm:$0xf]  ;;  %v4313_v30 = vld [vmem:[#allocation6 + $0x30c] sm:$0xf0]  ;;  %v3022_v39 = vor.u32 %v4249_v24, %v3021_v23  ;;  %1693 = vmatpush.bf16.msra.mxu0 %v2894_v34 }
  0x3b   :  { %v3277_v29 = vld [vmem:[#allocation6 + $0x300] sm:$0xf]  ;;  %v4373_v32 = vld [vmem:[#allocation6 + $0x4ec] sm:$0xf0]  ;;  %v1417_v38 = vpack.c.b16 %v1165_v26, %v1165_v26  ;;  %v3150_v40 = vor.u32 %v4281_v28, %v3149_v25 }
  0x3c   :  { %v3517_v31 = vld [vmem:[#allocation6 + $0x4e0] sm:$0xf]  ;;  %v4405_v35 = vld [vmem:[#allocation6 + $0x5ec] sm:$0xf0]  ;;  %v3278_v41 = vor.u32 %v4313_v30, %v3277_v29  ;;  %1707 = vmatpush.bf16.msra.mxu1 %v3022_v39 }
  0x3d   :  { %v3645_v33 = vld [vmem:[#allocation6 + $0x5e0] sm:$0xf]  ;;  %v4437_v37 = vld [vmem:[#allocation6 + $0x6ec] sm:$0xf0]  ;;  %v3518_v42 = vor.u32 %v4373_v32, %v3517_v31  ;;  %v1675_v51 = vsel %vm1673_vm0, %v1417_v38, 0  ;;  %1721 = vmatpush.bf16.msra.mxu2 %v3150_v40 }
  0x3e   :  { %v3773_v36 = vld [vmem:[#allocation6 + $0x6e0] sm:$0xf]  ;;  %v4369_v44 = vld [vmem:[#allocation6 + $0x4cc] sm:$0xf0]  ;;  %v3646_v46 = vor.u32 %v4405_v35, %v3645_v33  ;;  %1735 = vmatpush.bf16.msra.mxu3 %v3278_v41 }
  0x3f   :  { %v3501_v43 = vld [vmem:[#allocation6 + $0x4c0] sm:$0xf]  ;;  %v3774_v47 = vor.u32 %v4437_v37, %v3773_v36  ;;  %v4401_v48 = vld [vmem:[#allocation6 + $0x5cc] sm:$0xf0]  ;;  %1742 = vmatpush.bf16.msrb.mxu0 %v3518_v42  ;;  %1708 = vmatmul.bf16.vlgmr.msra.gmra.mxu1 %v4806_v12 }
  0x40   :  { %v3629_v45 = vld [vmem:[#allocation6 + $0x5c0] sm:$0xf]  ;;  %v4433_v50 = vld [vmem:[#allocation6 + $0x6cc] sm:$0xf0]  ;;  %v3502_v57 = vor.u32 %v4369_v44, %v3501_v43  ;;  %1756 = vmatpush.bf16.msrb.mxu1 %v3646_v46  ;;  %1722 = vmatmul.bf16.vlgmr.msra.gmra.mxu2 %v4802_v3 }
  0x41   :  { %v3757_v49 = vld [vmem:[#allocation6 + $0x6c0] sm:$0xf]  ;;  %v4461_v53 = vld [vmem:[#allocation6 + $0x7ac] sm:$0xf0]  ;;  %1770 = vmatpush.bf16.msrb.mxu2 %v3774_v47  ;;  %v3630_v62 = vor.u32 %v4401_v48, %v3629_v45  ;;  %1736 = vmatmul.bf16.vlgmr.msra.gmra.mxu3 %v4808_v19 }
  0x42   :  { %v3869_v52 = vld [vmem:[#allocation6 + $0x7a0] sm:$0xf]  ;;  %v4365_v59 = vld [vmem:[#allocation6 + $0x4ac] sm:$0xf0]  ;;  %v3758_v63 = vor.u32 %v4433_v50, %v3757_v49  ;;  %1785 = vmatpush.bf16.msrb.mxu3 %v1675_v51 }
  0x43   :  { %v2861_v54 = vld [vmem:[#allocation3] sm:$0xf]  ;;  %v4397_v1 = vld [vmem:[#allocation6 + $0x5ac] sm:$0xf0]  ;;  %v3870_v4 = vor.u32 %v4461_v53, %v3869_v52  ;;  %1743 = vmatpush.bf16.msrb.mxu0 %v3502_v57 }
  0x44   :  { %v4211_v55 = vld [vmem:[#allocation3 + $0x1c] sm:$0xf0]  ;;  %v4429_v5 = vld [vmem:[#allocation6 + $0x6ac] sm:$0xf0]  ;;  %1757 = vmatpush.bf16.msrb.mxu1 %v3630_v62 }
  0x45   :  { %v3485_v58 = vld [vmem:[#allocation6 + $0x4a0] sm:$0xf]  ;;  %v4800_v60 = vor.u32 %v4211_v55, %v2861_v54  ;;  %v4457_v7 = vld [vmem:[#allocation6 + $0x78c] sm:$0xf0]  ;;  %1771 = vmatpush.bf16.msrb.mxu2 %v3758_v63 }
  0x46   :  { %v3613_v0 = vld [vmem:[#allocation6 + $0x5a0] sm:$0xf]  ;;  %v3486_v11 = vor.u32 %v4365_v59, %v3485_v58  ;;  %v4361_v17 = vld [vmem:[#allocation6 + $0x48c] sm:$0xf0]  ;;  %1786 = vmatpush.bf16.msrb.mxu3 %v3870_v4 }
  0x47   :  { %v3741_v2 = vld [vmem:[#allocation6 + $0x6a0] sm:$0xf]  ;;  %1694 = vmatmul.bf16.vlgmr.msra.gmra.mxu0 %v4800_v60  ;;  %v3614_v14 = vor.u32 %v4397_v1, %v3613_v0  ;;  %v4393_v22 = vld [vmem:[#allocation6 + $0x58c] sm:$0xf0]  ;;  %v4243_v0 = vld [vmem:[#allocation6 + $0xe4] sm:$0xf] }
  0x48   :  { %v3853_v6 = vld [vmem:[#allocation6 + $0x780] sm:$0xf]  ;;  %v3742_v15 = vor.u32 %v4429_v5, %v3741_v2  ;;  %v4425_v24 = vld [vmem:[#allocation6 + $0x68c] sm:$0xf0]  ;;  %1744 = vmatpush.bf16.msrb.mxu0 %v3486_v11  ;;  %v3007_v1 = vld [vmem:[#allocation6 + $0xf0] sm:$0xf0] }
  0x49   :  { %v3469_v16 = vld [vmem:[#allocation6 + $0x480] sm:$0xf]  ;;  %v3854_v21 = vor.u32 %v4457_v7, %v3853_v6  ;;  %v4453_v26 = vld [vmem:[#allocation6 + $0x76c] sm:$0xf0]  ;;  %1758 = vmatpush.bf16.msrb.mxu1 %v3614_v14 }
  0x4a   :  { %v3597_v18 = vld [vmem:[#allocation6 + $0x580] sm:$0xf]  ;;  %v3470_v27 = vor.u32 %v4361_v17, %v3469_v16  ;;  %1772 = vmatpush.bf16.msrb.mxu2 %v3742_v15  ;;  %v4357_v31 = vld [vmem:[#allocation6 + $0x46c] sm:$0xf0]  ;;  %v4239_v15 = vld [vmem:[#allocation6 + $0xc4] sm:$0xf] }
  0x4b   :  { %v3725_v23 = vld [vmem:[#allocation6 + $0x680] sm:$0xf]  ;;  %v3598_v28 = vor.u32 %v4393_v22, %v3597_v18  ;;  %1787 = vmatpush.bf16.msrb.mxu3 %v3854_v21  ;;  %v4389_v34 = vld [vmem:[#allocation6 + $0x56c] sm:$0xf0]  ;;  %v2991_v16 = vld [vmem:[#allocation6 + $0xd0] sm:$0xf0]  ;;  %v3010_v22 = vor.u32 %v4243_v0, %v3007_v1 }
  0x4c   :  { %v3837_v25 = vld [vmem:[#allocation6 + $0x760] sm:$0xf]  ;;  %v3726_v29 = vor.u32 %v4425_v24, %v3725_v23  ;;  %v4421_v36 = vld [vmem:[#allocation6 + $0x66c] sm:$0xf0]  ;;  %1745 = vmatpush.bf16.msrb.mxu0 %v3470_v27  ;;  %v3135_v17 = vld [vmem:[#allocation6 + $0x1f0] sm:$0xf0] }
  0x4d   :  { %v3453_v30 = vld [vmem:[#allocation6 + $0x460] sm:$0xf]  ;;  %v3838_v33 = vor.u32 %v4453_v26, %v3837_v25  ;;  %v4449_v38 = vld [vmem:[#allocation6 + $0x74c] sm:$0xf0]  ;;  %1759 = vmatpush.bf16.msrb.mxu1 %v3598_v28  ;;  %v4307_v18 = vld [vmem:[#allocation6 + $0x2e4] sm:$0xf] }
  0x4e   :  { %v3581_v32 = vld [vmem:[#allocation6 + $0x560] sm:$0xf]  ;;  %v3454_v39 = vor.u32 %v4357_v31, %v3453_v30  ;;  %1773 = vmatpush.bf16.msrb.mxu2 %v3726_v29  ;;  %v4353_v43 = vld [vmem:[#allocation6 + $0x44c] sm:$0xf0]  ;;  %v3263_v21 = vld [vmem:[#allocation6 + $0x2f0] sm:$0xf0] }
  0x4f   :  { %v3709_v35 = vld [vmem:[#allocation6 + $0x660] sm:$0xf]  ;;  %v3582_v40 = vor.u32 %v4389_v34, %v3581_v32  ;;  %1788 = vmatpush.bf16.msrb.mxu3 %v3838_v33  ;;  %v4385_v46 = vld [vmem:[#allocation6 + $0x54c] sm:$0xf0]  ;;  %v4339_v23 = vld [vmem:[#allocation6 + $0x3e4] sm:$0xf] }
  0x50   :  { %v3821_v37 = vld [vmem:[#allocation6 + $0x740] sm:$0xf]  ;;  %v3710_v41 = vor.u32 %v4421_v36, %v3709_v35  ;;  %v4417_v48 = vld [vmem:[#allocation6 + $0x64c] sm:$0xf0]  ;;  %1746 = vmatpush.bf16.msrb.mxu0 %v3454_v39  ;;  %v3391_v24 = vld [vmem:[#allocation6 + $0x3f0] sm:$0xf0]  ;;  %v3138_v35 = vor.u32 %v4275_v13, %v3135_v17  ;;  %v3266_v36 = vor.u32 %v4307_v18, %v3263_v21 }
  0x51   :  { %v3437_v42 = vld [vmem:[#allocation6 + $0x440] sm:$0xf]  ;;  %v3822_v45 = vor.u32 %v4449_v38, %v3821_v37  ;;  %v4445_v50 = vld [vmem:[#allocation6 + $0x72c] sm:$0xf0]  ;;  %1760 = vmatpush.bf16.msrb.mxu1 %v3582_v40  ;;  %v2885_v28 = vld [vmem:[#allocation3 + $0x18] sm:$0xf]  ;;  %v2994_v40 = vor.u32 %v4239_v15, %v2991_v16 }
  0x52   :  { %v3565_v44 = vld [vmem:[#allocation6 + $0x540] sm:$0xf]  ;;  %v3438_v51 = vor.u32 %v4353_v43, %v3437_v42  ;;  %v4349_v53 = vld [vmem:[#allocation6 + $0x42c] sm:$0xf0]  ;;  %1774 = vmatpush.bf16.msrb.mxu2 %v3710_v41  ;;  %v4214_v29 = vld [vmem:[#allocation3 + $0x34] sm:$0xf0]  ;;  %v3394_v41 = vor.u32 %v4339_v23, %v3391_v24 }
  0x53   :  { %v3693_v47 = vld [vmem:[#allocation6 + $0x640] sm:$0xf]  ;;  %v3566_v54 = vor.u32 %v4385_v46, %v3565_v44  ;;  %v4381_v57 = vld [vmem:[#allocation6 + $0x52c] sm:$0xf0]  ;;  %1789 = vmatpush.bf16.msrb.mxu3 %v3822_v45  ;;  %v4209_v32 = vld [vmem:[#allocation3 + $0x14] sm:$0xf]  ;;  %v4814_v46 = vor.u32 %v4214_v29, %v2885_v28 }
  0x54   :  { %v3805_v49 = vld [vmem:[#allocation6 + $0x720] sm:$0xf]  ;;  %v3694_v55 = vor.u32 %v4417_v48, %v3693_v47  ;;  %v4413_v61 = vld [vmem:[#allocation6 + $0x62c] sm:$0xf0]  ;;  %1747 = vmatpush.bf16.msrb.mxu0 %v3438_v51  ;;  %v2879_v33 = vld [vmem:[#allocation3 + $0x30] sm:$0xf0] }
  0x55   :  { %v3421_v52 = vld [vmem:[#allocation6 + $0x420] sm:$0xf]  ;;  %v3806_v59 = vor.u32 %v4445_v50, %v3805_v49  ;;  %v4441_v63 = vld [vmem:[#allocation6 + $0x70c] sm:$0xf0]  ;;  %1761 = vmatpush.bf16.msrb.mxu1 %v3566_v54  ;;  %v4210_v34 = vld [vmem:[#allocation3 + $0x1c] sm:$0xf]  ;;  %v4816_v50 = vor.u32 %v4209_v32, %v2879_v33 }
  0x56   :  { %v3549_v56 = vld [vmem:[#allocation6 + $0x520] sm:$0xf]  ;;  %v3422_v4 = vor.u32 %v4349_v53, %v3421_v52  ;;  %v4345_v5 = vld [vmem:[#allocation6 + $0x40c] sm:$0xf0]  ;;  %1775 = vmatpush.bf16.msrb.mxu2 %v3694_v55  ;;  %v2887_v37 = vld [vmem:[#allocation3 + $0x38] sm:$0xf0] }
  0x57   :  { %v3677_v58 = vld [vmem:[#allocation6 + $0x620] sm:$0xf]  ;;  %v4377_v7 = vld [vmem:[#allocation6 + $0x50c] sm:$0xf0]  ;;  %v3550_v8 = vor.u32 %v4381_v57, %v3549_v56  ;;  %1790 = vmatpush.bf16.msrb.mxu3 %v3806_v59  ;;  %v4235_v38 = vld [vmem:[#allocation6 + $0xa4] sm:$0xf]  ;;  %v4818_v51 = vor.u32 %v4210_v34, %v2887_v37 }
  0x58   :  { %v3789_v62 = vld [vmem:[#allocation6 + $0x700] sm:$0xf]  ;;  %v3678_v9 = vor.u32 %v4413_v61, %v3677_v58  ;;  %v4409_v11 = vld [vmem:[#allocation6 + $0x60c] sm:$0xf0]  ;;  %1748 = vmatpush.bf16.msrb.mxu0 %v3422_v4  ;;  %v4271_v39 = vld [vmem:[#allocation6 + $0x1c4] sm:$0xf] }
  0x59   :  { %v3405_v2 = vld [vmem:[#allocation6 + $0x400] sm:$0xf]  ;;  %v3790_v14 = vor.u32 %v4441_v63, %v3789_v62  ;;  %v2877_v25 = vld [vmem:[#allocation3 + $0x10] sm:$0xf]  ;;  %1762 = vmatpush.bf16.msrb.mxu1 %v3550_v8  ;;  %v3119_v42 = vld [vmem:[#allocation6 + $0x1d0] sm:$0xf0] }
  0x5a   :  { %v3533_v6 = vld [vmem:[#allocation6 + $0x500] sm:$0xf]  ;;  %v3406_v26 = vor.u32 %v4345_v5, %v3405_v2  ;;  %v4213_v27 = vld [vmem:[#allocation3 + $0x2c] sm:$0xf0]  ;;  %1776 = vmatpush.bf16.msrb.mxu2 %v3678_v9  ;;  %v4303_v43 = vld [vmem:[#allocation6 + $0x2c4] sm:$0xf]  ;;  %v3122_v52 = vor.u32 %v4271_v39, %v3119_v42 }
  0x5b   :  { %v3661_v10 = vld [vmem:[#allocation6 + $0x600] sm:$0xf]  ;;  %v3534_v30 = vor.u32 %v4377_v7, %v3533_v6  ;;  %1791 = vmatpush.bf16.msrb.mxu3 %v3790_v14  ;;  %v3247_v44 = vld [vmem:[#allocation6 + $0x2d0] sm:$0xf0]  ;;  %v4812_v45 = vor.u32 %v4213_v27, %v2877_v25  ;;  %v4335_v48 = vld [vmem:[#allocation6 + $0x3c4] sm:$0xf] }
  0x5c   :  { %v3662_v31 = vor.u32 %v4409_v11, %v3661_v10  ;;  %1749 = vmatpush.bf16.msrb.mxu0 %v3406_v26  ;;  %v2975_v47 = vld [vmem:[#allocation6 + $0xb0] sm:$0xf0]  ;;  %v3250_v53 = vor.u32 %v4303_v43, %v3247_v44  ;;  %v4231_v54 = vld [vmem:[#allocation6 + $0x84] sm:$0xf] }
  0x5d   :  { %v3375_v49 = vld [vmem:[#allocation6 + $0x3d0] sm:$0xf0]  ;;  %1763 = vmatpush.bf16.msrb.mxu1 %v3534_v30  ;;  %v4267_v55 = vld [vmem:[#allocation6 + $0x1a4] sm:$0xf]  ;;  %v2978_v56 = vor.u32 %v4235_v38, %v2975_v47 }
  0x5e   :  { %1777 = vmatpush.bf16.msrb.mxu2 %v3662_v31  ;;  %v3378_v57 = vor.u32 %v4335_v48, %v3375_v49  ;;  %v3103_v58 = vld [vmem:[#allocation6 + $0x1b0] sm:$0xf0]  ;;  %v4299_v59 = vld [vmem:[#allocation6 + $0x2a4] sm:$0xf]  ;;  %3883 = vmatmul.msk.bf16.vlgmr.msrb.gmra.mxu3 %vm1669_vm1, %v4818_v51 }
  0x5f   :  { %1798 = vmatpush.bf16.msra.mxu3 %v3010_v22  ;;  %v3231_v61 = vld [vmem:[#allocation6 + $0x2b0] sm:$0xf0]  ;;  %1750 = vmatmul.bf16.vlgmr.msrb.gmra.mxu0 %v4812_v45  ;;  %v4331_v63 = vld [vmem:[#allocation6 + $0x3a4] sm:$0xf]  ;;  %v3106_v1 = vor.u32 %v4267_v55, %v3103_v58 }
  0x60   :  { %1812 = vmatpush.bf16.msra.mxu0 %v3138_v35  ;;  %v2959_v62 = vld [vmem:[#allocation6 + $0x90] sm:$0xf0]  ;;  %1764 = vmatmul.bf16.vlgmr.msrb.gmra.mxu1 %v4816_v50  ;;  %v3234_v2 = vor.u32 %v4299_v59, %v3231_v61  ;;  %v4227_v4 = vld [vmem:[#allocation6 + $0x64] sm:$0xf]  ;;  %v1166_v59 = vunpack.c.h.b16 %v4796_v20 }
  0x61   :  { %1826 = vmatpush.bf16.msra.mxu1 %v3266_v36  ;;  %1778 = vmatmul.bf16.vlgmr.msrb.gmra.mxu2 %v4814_v46  ;;  %v3359_v0 = vld [vmem:[#allocation6 + $0x3b0] sm:$0xf0]  ;;  %v4263_v5 = vld [vmem:[#allocation6 + $0x184] sm:$0xf]  ;;  %v2962_v6 = vor.u32 %v4231_v54, %v2959_v62 }
  0x62   :  { %1840 = vmatpush.bf16.msra.mxu2 %v3394_v41  ;;  %v3362_v7 = vor.u32 %v4331_v63, %v3359_v0  ;;  %v3087_v8 = vld [vmem:[#allocation6 + $0x190] sm:$0xf0]  ;;  %v4295_v9 = vld [vmem:[#allocation6 + $0x284] sm:$0xf] }
  0x63   :  { %1799 = vmatpush.bf16.msra.mxu3 %v2994_v40  ;;  %v3215_v10 = vld [vmem:[#allocation6 + $0x290] sm:$0xf0]  ;;  %v4327_v13 = vld [vmem:[#allocation6 + $0x384] sm:$0xf]  ;;  %v3090_v15 = vor.u32 %v4263_v5, %v3087_v8 }
  0x64   :  { %1813 = vmatpush.bf16.msra.mxu0 %v3122_v52  ;;  %v2943_v11 = vld [vmem:[#allocation6 + $0x70] sm:$0xf0]  ;;  %v3218_v16 = vor.u32 %v4295_v9, %v3215_v10  ;;  %v4223_v17 = vld [vmem:[#allocation6 + $0x44] sm:$0xf] }
  0x65   :  { %1827 = vmatpush.bf16.msra.mxu1 %v3250_v53  ;;  %v3343_v14 = vld [vmem:[#allocation6 + $0x390] sm:$0xf0]  ;;  %v4259_v18 = vld [vmem:[#allocation6 + $0x164] sm:$0xf]  ;;  %v2946_v21 = vor.u32 %v4227_v4, %v2943_v11 }
  0x66   :  { %1841 = vmatpush.bf16.msra.mxu2 %v3378_v57  ;;  %v3346_v22 = vor.u32 %v4327_v13, %v3343_v14  ;;  %v3071_v23 = vld [vmem:[#allocation6 + $0x170] sm:$0xf0]  ;;  %v4291_v24 = vld [vmem:[#allocation6 + $0x264] sm:$0xf] }
  0x67   :  { %1800 = vmatpush.bf16.msra.mxu3 %v2978_v56  ;;  %v3199_v25 = vld [vmem:[#allocation6 + $0x270] sm:$0xf0]  ;;  %v4323_v27 = vld [vmem:[#allocation6 + $0x364] sm:$0xf]  ;;  %v3074_v29 = vor.u32 %v4259_v18, %v3071_v23 }
  0x68   :  { %1814 = vmatpush.bf16.msra.mxu0 %v3106_v1  ;;  %v2927_v26 = vld [vmem:[#allocation6 + $0x50] sm:$0xf0]  ;;  %v3202_v30 = vor.u32 %v4291_v24, %v3199_v25  ;;  %v4219_v31 = vld [vmem:[#allocation6 + $0x24] sm:$0xf] }
  0x69   :  { %1828 = vmatpush.bf16.msra.mxu1 %v3234_v2  ;;  %v3327_v28 = vld [vmem:[#allocation6 + $0x370] sm:$0xf0]  ;;  %v4255_v32 = vld [vmem:[#allocation6 + $0x144] sm:$0xf]  ;;  %v2930_v33 = vor.u32 %v4223_v17, %v2927_v26  ;;  %v1418_v17 = vpack.c.b16 %v1166_v59, %v1166_v59 }
  0x6a   :  { %1842 = vmatpush.bf16.msra.mxu2 %v3362_v7  ;;  %v3330_v34 = vor.u32 %v4323_v27, %v3327_v28  ;;  %v3055_v35 = vld [vmem:[#allocation6 + $0x150] sm:$0xf0]  ;;  %v4287_v36 = vld [vmem:[#allocation6 + $0x244] sm:$0xf] }
  0x6b   :  { %1801 = vmatpush.bf16.msra.mxu3 %v2962_v6  ;;  %v3183_v37 = vld [vmem:[#allocation6 + $0x250] sm:$0xf0]  ;;  %v4319_v39 = vld [vmem:[#allocation6 + $0x344] sm:$0xf]  ;;  %v3058_v41 = vor.u32 %v4255_v32, %v3055_v35 }
  0x6c   :  { %1815 = vmatpush.bf16.msra.mxu0 %v3090_v15  ;;  %v2911_v38 = vld [vmem:[#allocation6 + $0x30] sm:$0xf0]  ;;  %v3186_v42 = vor.u32 %v4287_v36, %v3183_v37  ;;  %v4215_v43 = vld [vmem:[#allocation6 + $0x4] sm:$0xf] }
  0x6d   :  { %1829 = vmatpush.bf16.msra.mxu1 %v3218_v16  ;;  %v3311_v40 = vld [vmem:[#allocation6 + $0x350] sm:$0xf0]  ;;  %v4251_v44 = vld [vmem:[#allocation6 + $0x124] sm:$0xf]  ;;  %v2914_v47 = vor.u32 %v4219_v31, %v2911_v38 }
  0x6e   :  { %1843 = vmatpush.bf16.msra.mxu2 %v3346_v22  ;;  %v3314_v48 = vor.u32 %v4319_v39, %v3311_v40  ;;  %v3039_v49 = vld [vmem:[#allocation6 + $0x130] sm:$0xf0]  ;;  %v4283_v52 = vld [vmem:[#allocation6 + $0x224] sm:$0xf] }
  0x6f   :  { %1802 = vmatpush.bf16.msra.mxu3 %v2946_v21  ;;  %v3167_v53 = vld [vmem:[#allocation6 + $0x230] sm:$0xf0]  ;;  %v4315_v55 = vld [vmem:[#allocation6 + $0x324] sm:$0xf]  ;;  %v3042_v61 = vor.u32 %v4251_v44, %v3039_v49 }
  0x70   :  { %1816 = vmatpush.bf16.msra.mxu0 %v3074_v29  ;;  %v2895_v54 = vld [vmem:[#allocation6 + $0x10] sm:$0xf0]  ;;  %v4371_v57 = vld [vmem:[#allocation6 + $0x4e4] sm:$0xf]  ;;  %v3170_v62 = vor.u32 %v4283_v52, %v3167_v53 }
  0x71   :  { %1830 = vmatpush.bf16.msra.mxu1 %v3202_v30  ;;  %v3295_v56 = vld [vmem:[#allocation6 + $0x330] sm:$0xf0]  ;;  %v4247_v63 = vld [vmem:[#allocation6 + $0x104] sm:$0xf]  ;;  %v2898_v2 = vor.u32 %v4215_v43, %v2895_v54  ;;  %v1678_v30 = vsel %vm1673_vm0, %v1418_v17, 0 }
  0x72   :  { %1844 = vmatpush.bf16.msra.mxu2 %v3330_v34  ;;  %v3519_v58 = vld [vmem:[#allocation6 + $0x4f0] sm:$0xf0]  ;;  %v4279_v1 = vld [vmem:[#allocation6 + $0x204] sm:$0xf]  ;;  %v3298_v4 = vor.u32 %v4315_v55, %v3295_v56 }
  0x73   :  { %1803 = vmatpush.bf16.msra.mxu3 %v2930_v33  ;;  %v3023_v0 = vld [vmem:[#allocation6 + $0x110] sm:$0xf0]  ;;  %v4311_v6 = vld [vmem:[#allocation6 + $0x304] sm:$0xf]  ;;  %v3522_v8 = vor.u32 %v4371_v57, %v3519_v58 }
  0x74   :  { %1817 = vmatpush.bf16.msra.mxu0 %v3058_v41  ;;  %v3151_v5 = vld [vmem:[#allocation6 + $0x210] sm:$0xf0]  ;;  %v4367_v9 = vld [vmem:[#allocation6 + $0x4c4] sm:$0xf]  ;;  %v3026_v15 = vor.u32 %v4247_v63, %v3023_v0 }
  0x75   :  { %1831 = vmatpush.bf16.msra.mxu1 %v3186_v42  ;;  %v3279_v7 = vld [vmem:[#allocation6 + $0x310] sm:$0xf0]  ;;  %v4403_v10 = vld [vmem:[#allocation6 + $0x5e4] sm:$0xf]  ;;  %v3154_v16 = vor.u32 %v4279_v1, %v3151_v5 }
  0x76   :  { %1845 = vmatpush.bf16.msra.mxu2 %v3314_v48  ;;  %v3647_v11 = vld [vmem:[#allocation6 + $0x5f0] sm:$0xf0]  ;;  %v4435_v20 = vld [vmem:[#allocation6 + $0x6e4] sm:$0xf]  ;;  %v3282_v18 = vor.u32 %v4311_v6, %v3279_v7 }
  0x77   :  { %1804 = vmatpush.bf16.msra.mxu3 %v2914_v47  ;;  %v3503_v13 = vld [vmem:[#allocation6 + $0x4d0] sm:$0xf0]  ;;  %v3650_v21 = vor.u32 %v4403_v10, %v3647_v11  ;;  %v4363_v24 = vld [vmem:[#allocation6 + $0x4a4] sm:$0xf] }
  0x78   :  { %v3775_v14 = vld [vmem:[#allocation6 + $0x6f0] sm:$0xf0]  ;;  %1818 = vmatpush.bf16.msra.mxu0 %v3042_v61  ;;  %v3506_v22 = vor.u32 %v4367_v9, %v3503_v13  ;;  %v4399_v25 = vld [vmem:[#allocation6 + $0x5c4] sm:$0xf] }
  0x79   :  { %1832 = vmatpush.bf16.msra.mxu1 %v3170_v62  ;;  %v3778_v23 = vor.u32 %v4435_v20, %v3775_v14  ;;  %v3631_v26 = vld [vmem:[#allocation6 + $0x5d0] sm:$0xf0]  ;;  %v4431_v28 = vld [vmem:[#allocation6 + $0x6c4] sm:$0xf] }
  0x7a   :  { %1846 = vmatpush.bf16.msra.mxu2 %v3298_v4  ;;  %v3487_v27 = vld [vmem:[#allocation6 + $0x4b0] sm:$0xf0]  ;;  %v4459_v31 = vld [vmem:[#allocation6 + $0x7a4] sm:$0xf]  ;;  %v3634_v33 = vor.u32 %v4399_v25, %v3631_v26 }
  0x7b   :  { %1805 = vmatpush.bf16.msra.mxu3 %v2898_v2  ;;  %v3759_v29 = vld [vmem:[#allocation6 + $0x6d0] sm:$0xf0]  ;;  %v3490_v34 = vor.u32 %v4363_v24, %v3487_v27  ;;  %v4359_v36 = vld [vmem:[#allocation6 + $0x484] sm:$0xf] }
  0x7c   :  { %1819 = vmatpush.bf16.msra.mxu0 %v3026_v15  ;;  %v3871_v32 = vld [vmem:[#allocation6 + $0x7b0] sm:$0xf0]  ;;  %v3762_v35 = vor.u32 %v4431_v28, %v3759_v29  ;;  %v4395_v37 = vld [vmem:[#allocation6 + $0x5a4] sm:$0xf] }
  0x7d   :  { %1833 = vmatpush.bf16.msra.mxu1 %v3154_v16  ;;  %v3615_v38 = vld [vmem:[#allocation6 + $0x5b0] sm:$0xf0]  ;;  %v3874_v39 = vor.u32 %v4459_v31, %v3871_v32  ;;  %v4427_v41 = vld [vmem:[#allocation6 + $0x6a4] sm:$0xf] }
  0x7e   :  { %1847 = vmatpush.bf16.msra.mxu2 %v3282_v18  ;;  %v3471_v40 = vld [vmem:[#allocation6 + $0x490] sm:$0xf0]  ;;  %1806 = vmatmul.bf16.vlgmr.msra.gmra.mxu3 %v4800_v60  ;;  %v4455_v43 = vld [vmem:[#allocation6 + $0x784] sm:$0xf]  ;;  %v3618_v47 = vor.u32 %v4395_v37, %v3615_v38  ;;  %v3141_v37 = vld [vmem:[#allocation6 + $0x1e8] sm:$0xf] }
  0x7f   :  { %1854 = vmatpush.bf16.msrb.mxu3 %v3522_v8  ;;  %v3743_v42 = vld [vmem:[#allocation6 + $0x6b0] sm:$0xf0]  ;;  %1820 = vmatmul.bf16.vlgmr.msra.gmra.mxu0 %v4806_v12  ;;  %v4355_v48 = vld [vmem:[#allocation6 + $0x464] sm:$0xf]  ;;  %v3474_v49 = vor.u32 %v4359_v36, %v3471_v40  ;;  %v4278_v38 = vld [vmem:[#allocation6 + $0x1f4] sm:$0xf0] }
  0x80   :  { %1868 = vmatpush.bf16.msrb.mxu0 %v3650_v21  ;;  %v3855_v44 = vld [vmem:[#allocation6 + $0x790] sm:$0xf0]  ;;  %1834 = vmatmul.bf16.vlgmr.msra.gmra.mxu1 %v4802_v3  ;;  %v3746_v52 = vor.u32 %v4427_v41, %v3743_v42  ;;  %v4391_v54 = vld [vmem:[#allocation6 + $0x584] sm:$0xf]  ;;  %v3013_v40 = vld [vmem:[#allocation6 + $0xe8] sm:$0xf] }
  0x81   :  { %1882 = vmatpush.bf16.msrb.mxu1 %v3778_v23  ;;  %1848 = vmatmul.bf16.vlgmr.msra.gmra.mxu2 %v4808_v19  ;;  %v3455_v53 = vld [vmem:[#allocation6 + $0x470] sm:$0xf0]  ;;  %v3858_v56 = vor.u32 %v4455_v43, %v3855_v44  ;;  %v4423_v57 = vld [vmem:[#allocation6 + $0x684] sm:$0xf]  ;;  %v4246_v41 = vld [vmem:[#allocation6 + $0xf4] sm:$0xf0] }
  0x82   :  { %1897 = vmatpush.bf16.msrb.mxu2 %v1678_v30  ;;  %v3599_v55 = vld [vmem:[#allocation6 + $0x590] sm:$0xf0]  ;;  %v4451_v59 = vld [vmem:[#allocation6 + $0x764] sm:$0xf]  ;;  %v3458_v63 = vor.u32 %v4355_v48, %v3455_v53  ;;  %v3142_v53 = vor.u32 %v4278_v38, %v3141_v37  ;;  %v3349_v37 = vld [vmem:[#allocation6 + $0x388] sm:$0xf] }
  0x83   :  { %1855 = vmatpush.bf16.msrb.mxu3 %v3506_v22  ;;  %v3727_v58 = vld [vmem:[#allocation6 + $0x690] sm:$0xf0]  ;;  %v3602_v62 = vor.u32 %v4391_v54, %v3599_v55  ;;  %v4351_v1 = vld [vmem:[#allocation6 + $0x444] sm:$0xf]  ;;  %v3125_v54 = vld [vmem:[#allocation6 + $0x1c8] sm:$0xf] }
  0x84   :  { %1869 = vmatpush.bf16.msrb.mxu0 %v3634_v33  ;;  %v3839_v61 = vld [vmem:[#allocation6 + $0x770] sm:$0xf0]  ;;  %v3730_v0 = vor.u32 %v4423_v57, %v3727_v58  ;;  %v4387_v2 = vld [vmem:[#allocation6 + $0x564] sm:$0xf]  ;;  %v3269_v55 = vld [vmem:[#allocation6 + $0x2e8] sm:$0xf]  ;;  %v3014_v57 = vor.u32 %v4246_v41, %v3013_v40 }
  0x85   :  { %1883 = vmatpush.bf16.msrb.mxu1 %v3762_v35  ;;  %v3583_v4 = vld [vmem:[#allocation6 + $0x570] sm:$0xf0]  ;;  %v3842_v5 = vor.u32 %v4451_v59, %v3839_v61  ;;  %v4419_v7 = vld [vmem:[#allocation6 + $0x664] sm:$0xf]  ;;  %v4274_v58 = vld [vmem:[#allocation6 + $0x1d4] sm:$0xf0] }
  0x86   :  { %1898 = vmatpush.bf16.msrb.mxu2 %v3874_v39  ;;  %v3439_v6 = vld [vmem:[#allocation6 + $0x450] sm:$0xf0]  ;;  %v4447_v9 = vld [vmem:[#allocation6 + $0x744] sm:$0xf]  ;;  %v3586_v11 = vor.u32 %v4387_v2, %v3583_v4  ;;  %v3397_v59 = vld [vmem:[#allocation6 + $0x3e8] sm:$0xf]  ;;  %v3126_v4 = vor.u32 %v4274_v58, %v3125_v54 }
  0x87   :  { %1856 = vmatpush.bf16.msrb.mxu3 %v3490_v34  ;;  %v3711_v8 = vld [vmem:[#allocation6 + $0x670] sm:$0xf0]  ;;  %v3442_v13 = vor.u32 %v4351_v1, %v3439_v6  ;;  %v4347_v14 = vld [vmem:[#allocation6 + $0x424] sm:$0xf]  ;;  %v4342_v61 = vld [vmem:[#allocation6 + $0x3f4] sm:$0xf0] }
  0x88   :  { %1870 = vmatpush.bf16.msrb.mxu0 %v3618_v47  ;;  %v3823_v10 = vld [vmem:[#allocation6 + $0x750] sm:$0xf0]  ;;  %v3714_v20 = vor.u32 %v4419_v7, %v3711_v8  ;;  %v4383_v15 = vld [vmem:[#allocation6 + $0x544] sm:$0xf]  ;;  %v3109_v6 = vld [vmem:[#allocation6 + $0x1a8] sm:$0xf] }
  0x89   :  { %1884 = vmatpush.bf16.msrb.mxu1 %v3746_v52  ;;  %v3567_v16 = vld [vmem:[#allocation6 + $0x550] sm:$0xf0]  ;;  %v3826_v17 = vor.u32 %v4447_v9, %v3823_v10  ;;  %v4415_v21 = vld [vmem:[#allocation6 + $0x644] sm:$0xf]  ;;  %v3253_v7 = vld [vmem:[#allocation6 + $0x2c8] sm:$0xf] }
  0x8a   :  { %1899 = vmatpush.bf16.msrb.mxu2 %v3858_v56  ;;  %v3423_v18 = vld [vmem:[#allocation6 + $0x430] sm:$0xf0]  ;;  %v4443_v23 = vld [vmem:[#allocation6 + $0x724] sm:$0xf]  ;;  %v3570_v25 = vor.u32 %v4383_v15, %v3567_v16  ;;  %v4310_v56 = vld [vmem:[#allocation6 + $0x2f4] sm:$0xf0] }
  0x8b   :  { %1857 = vmatpush.bf16.msrb.mxu3 %v3474_v49  ;;  %v3695_v22 = vld [vmem:[#allocation6 + $0x650] sm:$0xf0]  ;;  %v4343_v26 = vld [vmem:[#allocation6 + $0x404] sm:$0xf]  ;;  %v3426_v27 = vor.u32 %v4347_v14, %v3423_v18  ;;  %v3270_v2 = vor.u32 %v4310_v56, %v3269_v55  ;;  %v4306_v8 = vld [vmem:[#allocation6 + $0x2d4] sm:$0xf0] }
  0x8c   :  { %1871 = vmatpush.bf16.msrb.mxu0 %v3602_v62  ;;  %v3807_v24 = vld [vmem:[#allocation6 + $0x730] sm:$0xf0]  ;;  %v3698_v28 = vor.u32 %v4415_v21, %v3695_v22  ;;  %v4379_v30 = vld [vmem:[#allocation6 + $0x524] sm:$0xf]  ;;  %v4270_v10 = vld [vmem:[#allocation6 + $0x1b4] sm:$0xf0]  ;;  %v3254_v15 = vor.u32 %v4306_v8, %v3253_v7 }
  0x8d   :  { %1885 = vmatpush.bf16.msrb.mxu1 %v3730_v0  ;;  %v3407_v29 = vld [vmem:[#allocation6 + $0x410] sm:$0xf0]  ;;  %v3810_v32 = vor.u32 %v4443_v23, %v3807_v24  ;;  %v4411_v33 = vld [vmem:[#allocation6 + $0x624] sm:$0xf]  ;;  %v4242_v0 = vld [vmem:[#allocation6 + $0xd4] sm:$0xf0]  ;;  %v3110_v16 = vor.u32 %v4270_v10, %v3109_v6 }
  0x8e   :  { %1900 = vmatpush.bf16.msrb.mxu2 %v3842_v5  ;;  %v3551_v31 = vld [vmem:[#allocation6 + $0x530] sm:$0xf0]  ;;  %v4439_v35 = vld [vmem:[#allocation6 + $0x704] sm:$0xf]  ;;  %v3410_v43 = vor.u32 %v4343_v26, %v3407_v29  ;;  %v3398_v5 = vor.u32 %v4342_v61, %v3397_v59  ;;  %v4238_v14 = vld [vmem:[#allocation6 + $0xb4] sm:$0xf0] }
  0x8f   :  { %1858 = vmatpush.bf16.msrb.mxu3 %v3458_v63  ;;  %v3679_v34 = vld [vmem:[#allocation6 + $0x630] sm:$0xf0]  ;;  %v3554_v39 = vor.u32 %v4379_v30, %v3551_v31  ;;  %v4375_v42 = vld [vmem:[#allocation6 + $0x504] sm:$0xf]  ;;  %v2997_v63 = vld [vmem:[#allocation6 + $0xc8] sm:$0xf] }
  0x90   :  { %1872 = vmatpush.bf16.msrb.mxu0 %v3586_v11  ;;  %v3791_v36 = vld [vmem:[#allocation6 + $0x710] sm:$0xf0]  ;;  %v3682_v44 = vor.u32 %v4411_v33, %v3679_v34  ;;  %v4407_v48 = vld [vmem:[#allocation6 + $0x604] sm:$0xf]  ;;  %v2998_v9 = vor.u32 %v4242_v0, %v2997_v63  ;;  %v3381_v11 = vld [vmem:[#allocation6 + $0x3c8] sm:$0xf] }
  0x91   :  { %1886 = vmatpush.bf16.msrb.mxu1 %v3714_v20  ;;  %v3535_v47 = vld [vmem:[#allocation6 + $0x510] sm:$0xf0]  ;;  %v3794_v52 = vor.u32 %v4439_v35, %v3791_v36  ;;  %v2981_v20 = vld [vmem:[#allocation6 + $0xa8] sm:$0xf]  ;;  %v4302_v22 = vld [vmem:[#allocation6 + $0x2b4] sm:$0xf0] }
  0x92   :  { %1901 = vmatpush.bf16.msrb.mxu2 %v3826_v17  ;;  %v3663_v49 = vld [vmem:[#allocation6 + $0x610] sm:$0xf0]  ;;  %v3538_v62 = vor.u32 %v4375_v42, %v3535_v47  ;;  %v3093_v18 = vld [vmem:[#allocation6 + $0x188] sm:$0xf]  ;;  %v2982_v23 = vor.u32 %v4238_v14, %v2981_v20  ;;  %v4266_v24 = vld [vmem:[#allocation6 + $0x194] sm:$0xf0] }
  0x93   :  { %1859 = vmatpush.bf16.msrb.mxu3 %v3442_v13  ;;  %v3666_v1 = vor.u32 %v4407_v48, %v3663_v49  ;;  %v4338_v13 = vld [vmem:[#allocation6 + $0x3d4] sm:$0xf0]  ;;  %v3237_v21 = vld [vmem:[#allocation6 + $0x2a8] sm:$0xf]  ;;  %v3094_v30 = vor.u32 %v4266_v24, %v3093_v18 }
  0x94   :  { %1873 = vmatpush.bf16.msrb.mxu0 %v3570_v25  ;;  %v3382_v17 = vor.u32 %v4338_v13, %v3381_v11  ;;  %v3365_v25 = vld [vmem:[#allocation6 + $0x3a8] sm:$0xf]  ;;  %v4334_v26 = vld [vmem:[#allocation6 + $0x3b4] sm:$0xf0]  ;;  %v3238_v29 = vor.u32 %v4302_v22, %v3237_v21 }
  0x95   :  { %1887 = vmatpush.bf16.msrb.mxu1 %v3698_v28  ;;  %v4234_v28 = vld [vmem:[#allocation6 + $0x94] sm:$0xf0]  ;;  %v3366_v31 = vor.u32 %v4334_v26, %v3365_v25  ;;  %v3221_v33 = vld [vmem:[#allocation6 + $0x288] sm:$0xf] }
  0x96   :  { %1902 = vmatpush.bf16.msrb.mxu2 %v3810_v32  ;;  %v3077_v32 = vld [vmem:[#allocation6 + $0x168] sm:$0xf]  ;;  %v4298_v34 = vld [vmem:[#allocation6 + $0x294] sm:$0xf0] }
  0x97   :  { %1860 = vmatpush.bf16.msrb.mxu3 %v3426_v27  ;;  %v2965_v27 = vld [vmem:[#allocation6 + $0x88] sm:$0xf]  ;;  %v4262_v36 = vld [vmem:[#allocation6 + $0x174] sm:$0xf0]  ;;  %v3222_v41 = vor.u32 %v4298_v34, %v3221_v33 }
  0x98   :  { %1874 = vmatpush.bf16.msrb.mxu0 %v3554_v39  ;;  %v2966_v35 = vor.u32 %v4234_v28, %v2965_v27  ;;  %v4330_v38 = vld [vmem:[#allocation6 + $0x394] sm:$0xf0]  ;;  %v2949_v39 = vld [vmem:[#allocation6 + $0x68] sm:$0xf]  ;;  %v3078_v42 = vor.u32 %v4262_v36, %v3077_v32 }
  0x99   :  { %1888 = vmatpush.bf16.msrb.mxu1 %v3682_v44  ;;  %v4230_v40 = vld [vmem:[#allocation6 + $0x74] sm:$0xf0]  ;;  %v3061_v44 = vld [vmem:[#allocation6 + $0x148] sm:$0xf] }
  0x9a   :  { %1903 = vmatpush.bf16.msrb.mxu2 %v3794_v52  ;;  %v3205_v47 = vld [vmem:[#allocation6 + $0x268] sm:$0xf]  ;;  %v4294_v48 = vld [vmem:[#allocation6 + $0x274] sm:$0xf0]  ;;  %v2950_v49 = vor.u32 %v4230_v40, %v2949_v39 }
  0x9b   :  { %1861 = vmatpush.bf16.msrb.mxu3 %v3410_v43  ;;  %v3350_v43 = vor.u32 %v4330_v38, %v3349_v37  ;;  %v4258_v52 = vld [vmem:[#allocation6 + $0x154] sm:$0xf0]  ;;  %v2933_v55 = vld [vmem:[#allocation6 + $0x48] sm:$0xf] }
  0x9c   :  { %1875 = vmatpush.bf16.msrb.mxu0 %v3538_v62  ;;  %v4326_v54 = vld [vmem:[#allocation6 + $0x374] sm:$0xf0]  ;;  %v3045_v58 = vld [vmem:[#allocation6 + $0x128] sm:$0xf]  ;;  %v3062_v59 = vor.u32 %v4258_v52, %v3061_v44 }
  0x9d   :  { %1889 = vmatpush.bf16.msrb.mxu1 %v3666_v1  ;;  %3884 = vmatmul.msk.bf16.vlgmr.msrb.gmra.mxu2 %vm1669_vm1, %v4818_v51  ;;  %v4226_v56 = vld [vmem:[#allocation6 + $0x54] sm:$0xf0]  ;;  %v3189_v63 = vld [vmem:[#allocation6 + $0x248] sm:$0xf] }
  0x9e   :  { %1910 = vmatpush.bf16.msra.mxu2 %v3014_v57  ;;  %1862 = vmatmul.bf16.vlgmr.msrb.gmra.mxu3 %v4812_v45  ;;  %v3206_v57 = vor.u32 %v4294_v48, %v3205_v47  ;;  %v4254_v62 = vld [vmem:[#allocation6 + $0x134] sm:$0xf0]  ;;  %v2934_v1 = vor.u32 %v4226_v56, %v2933_v55  ;;  %v2917_v6 = vld [vmem:[#allocation6 + $0x28] sm:$0xf] }
  0x9f   :  { %1924 = vmatpush.bf16.msra.mxu3 %v3142_v53  ;;  %1876 = vmatmul.bf16.vlgmr.msrb.gmra.mxu0 %v4816_v50  ;;  %v3333_v53 = vld [vmem:[#allocation6 + $0x368] sm:$0xf]  ;;  %v4290_v0 = vld [vmem:[#allocation6 + $0x254] sm:$0xf0] }
  0xa0   :  { %1938 = vmatpush.bf16.msra.mxu0 %v3270_v2  ;;  %1890 = vmatmul.bf16.vlgmr.msrb.gmra.mxu1 %v4814_v46  ;;  %v3334_v61 = vor.u32 %v4326_v54, %v3333_v53  ;;  %v3317_v2 = vld [vmem:[#allocation6 + $0x348] sm:$0xf]  ;;  %v4222_v7 = vld [vmem:[#allocation6 + $0x34] sm:$0xf0]  ;;  %v3190_v8 = vor.u32 %v4290_v0, %v3189_v63 }
  0xa1   :  { %1952 = vmatpush.bf16.msra.mxu1 %v3398_v5  ;;  %v4836_v5 = vld [vmem:[#allocation6 + $0x7c8] sm:$0xff]  ;;  %v4286_v14 = vld [vmem:[#allocation6 + $0x234] sm:$0xf0] }
  0xa2   :  { %1911 = vmatpush.bf16.msra.mxu2 %v2998_v9  ;;  %v3046_v9 = vor.u32 %v4254_v62, %v3045_v58  ;;  %v2901_v11 = vld [vmem:[#allocation6 + $0x8] sm:$0xf]  ;;  %v4318_v21 = vld [vmem:[#allocation6 + $0x334] sm:$0xf0] }
  0xa3   :  { %1925 = vmatpush.bf16.msra.mxu3 %v3126_v4  ;;  %v4322_v4 = vld [vmem:[#allocation6 + $0x354] sm:$0xf0]  ;;  %v3029_v13 = vld [vmem:[#allocation6 + $0x108] sm:$0xf] }
  0xa4   :  { %1939 = vmatpush.bf16.msra.mxu0 %v3254_v15  ;;  %v3318_v10 = vor.u32 %v4322_v4, %v3317_v2  ;;  %v3173_v20 = vld [vmem:[#allocation6 + $0x228] sm:$0xf]  ;;  %v1167_v15 = vunpack.c.l.b16 %v4836_v5  ;;  %v4218_v22 = vld [vmem:[#allocation6 + $0x14] sm:$0xf0] }
  0xa5   :  { %1953 = vmatpush.bf16.msra.mxu1 %v3382_v17  ;;  %v4250_v17 = vld [vmem:[#allocation6 + $0x114] sm:$0xf0]  ;;  %v3301_v18 = vld [vmem:[#allocation6 + $0x328] sm:$0xf]  ;;  %v3174_v25 = vor.u32 %v4286_v14, %v3173_v20  ;;  %v2902_v34 = vor.u32 %v4218_v22, %v2901_v11 }
  0xa6   :  { %1912 = vmatpush.bf16.msra.mxu2 %v2982_v23  ;;  %v3653_v23 = vld [vmem:[#allocation6 + $0x5e8] sm:$0xf]  ;;  %v4406_v24 = vld [vmem:[#allocation6 + $0x5f4] sm:$0xf0]  ;;  %v3030_v28 = vor.u32 %v4250_v17, %v3029_v13  ;;  %v1419_v33 = vpack.c.b16 %v1167_v15, %v1167_v15 }
  0xa7   :  { %1926 = vmatpush.bf16.msra.mxu3 %v3110_v16  ;;  %v2918_v16 = vor.u32 %v4222_v7, %v2917_v6  ;;  %v3525_v26 = vld [vmem:[#allocation6 + $0x4e8] sm:$0xf]  ;;  %v4374_v27 = vld [vmem:[#allocation6 + $0x4f4] sm:$0xf0] }
  0xa8   :  { %1940 = vmatpush.bf16.msra.mxu0 %v3238_v29  ;;  %v3302_v29 = vor.u32 %v4318_v21, %v3301_v18  ;;  %v3285_v32 = vld [vmem:[#allocation6 + $0x308] sm:$0xf]  ;;  %v4314_v36 = vld [vmem:[#allocation6 + $0x314] sm:$0xf0]  ;;  %v3526_v39 = vor.u32 %v4374_v27, %v3525_v26 }
  0xa9   :  { %1954 = vmatpush.bf16.msra.mxu1 %v3366_v31  ;;  %v4282_v31 = vld [vmem:[#allocation6 + $0x214] sm:$0xf0]  ;;  %v3781_v37 = vld [vmem:[#allocation6 + $0x6e8] sm:$0xf]  ;;  %v3286_v47 = vor.u32 %v4314_v36, %v3285_v32 }
  0xaa   :  { %1913 = vmatpush.bf16.msra.mxu2 %v2966_v35  ;;  %v3654_v35 = vor.u32 %v4406_v24, %v3653_v23  ;;  %v4438_v38 = vld [vmem:[#allocation6 + $0x6f4] sm:$0xf0]  ;;  %v3637_v40 = vld [vmem:[#allocation6 + $0x5c8] sm:$0xf] }
  0xab   :  { %1927 = vmatpush.bf16.msra.mxu3 %v3094_v30  ;;  %v3157_v30 = vld [vmem:[#allocation6 + $0x208] sm:$0xf]  ;;  %v4370_v44 = vld [vmem:[#allocation6 + $0x4d4] sm:$0xf0]  ;;  %v3782_v48 = vor.u32 %v4438_v38, %v3781_v37 }
  0xac   :  { %1941 = vmatpush.bf16.msra.mxu0 %v3222_v41  ;;  %v4402_v41 = vld [vmem:[#allocation6 + $0x5d4] sm:$0xf0]  ;;  %v3621_v53 = vld [vmem:[#allocation6 + $0x5a8] sm:$0xf] }
  0xad   :  { %1955 = vmatpush.bf16.msra.mxu1 %v3350_v43  ;;  %v3509_v43 = vld [vmem:[#allocation6 + $0x4c8] sm:$0xf]  ;;  %v3638_v52 = vor.u32 %v4402_v41, %v3637_v40  ;;  %v4434_v55 = vld [vmem:[#allocation6 + $0x6d4] sm:$0xf0] }
  0xae   :  { %1914 = vmatpush.bf16.msra.mxu2 %v2950_v49  ;;  %v1681_v49 = vsel %vm1673_vm0, %v1419_v33, 0  ;;  %v3765_v54 = vld [vmem:[#allocation6 + $0x6c8] sm:$0xf]  ;;  %v3510_v56 = vor.u32 %v4370_v44, %v3509_v43  ;;  %v4366_v62 = vld [vmem:[#allocation6 + $0x4b4] sm:$0xf0] }
  0xaf   :  { %1928 = vmatpush.bf16.msra.mxu3 %v3078_v42  ;;  %v3158_v42 = vor.u32 %v4282_v31, %v3157_v30  ;;  %v3877_v58 = vld [vmem:[#allocation6 + $0x7a8] sm:$0xf]  ;;  %v3766_v63 = vor.u32 %v4434_v55, %v3765_v54  ;;  %v4430_v6 = vld [vmem:[#allocation6 + $0x6b4] sm:$0xf0] }
  0xb0   :  { %1942 = vmatpush.bf16.msra.mxu0 %v3206_v57  ;;  %v4398_v57 = vld [vmem:[#allocation6 + $0x5b4] sm:$0xf0]  ;;  %v3605_v2 = vld [vmem:[#allocation6 + $0x588] sm:$0xf] }
  0xb1   :  { %1956 = vmatpush.bf16.msra.mxu1 %v3334_v61  ;;  %v3493_v61 = vld [vmem:[#allocation6 + $0x4a8] sm:$0xf]  ;;  %v3622_v0 = vor.u32 %v4398_v57, %v3621_v53  ;;  %v4362_v13 = vld [vmem:[#allocation6 + $0x494] sm:$0xf0] }
  0xb2   :  { %1915 = vmatpush.bf16.msra.mxu2 %v2934_v1  ;;  %v3749_v4 = vld [vmem:[#allocation6 + $0x6a8] sm:$0xf]  ;;  %v3494_v7 = vor.u32 %v4366_v62, %v3493_v61  ;;  %v4426_v18 = vld [vmem:[#allocation6 + $0x694] sm:$0xf0] }
  0xb3   :  { %1929 = vmatpush.bf16.msra.mxu3 %v3062_v59  ;;  %v4462_v59 = vld [vmem:[#allocation6 + $0x7b4] sm:$0xf0]  ;;  %v3477_v11 = vld [vmem:[#allocation6 + $0x488] sm:$0xf]  ;;  %v3750_v20 = vor.u32 %v4430_v6, %v3749_v4  ;;  %v4244_v6 = vld [vmem:[#allocation6 + $0xec] sm:$0xf] }
  0xb4   :  { %1943 = vmatpush.bf16.msra.mxu0 %v3190_v8  ;;  %v3878_v1 = vor.u32 %v4462_v59, %v3877_v58  ;;  %v4394_v8 = vld [vmem:[#allocation6 + $0x594] sm:$0xf0]  ;;  %v3733_v17 = vld [vmem:[#allocation6 + $0x688] sm:$0xf]  ;;  %v3478_v21 = vor.u32 %v4362_v13, %v3477_v11  ;;  %v4308_v11 = vld [vmem:[#allocation6 + $0x2ec] sm:$0xf] }
  0xb5   :  { %1957 = vmatpush.bf16.msra.mxu1 %v3318_v10  ;;  %v4458_v10 = vld [vmem:[#allocation6 + $0x794] sm:$0xf0]  ;;  %v3606_v14 = vor.u32 %v4394_v8, %v3605_v2  ;;  %v3845_v23 = vld [vmem:[#allocation6 + $0x768] sm:$0xf]  ;;  %v3734_v27 = vor.u32 %v4426_v18, %v3733_v17  ;;  %v4276_v8 = vld [vmem:[#allocation6 + $0x1ec] sm:$0xf] }
  0xb6   :  { %1916 = vmatpush.bf16.msra.mxu2 %v2918_v16  ;;  %v3589_v16 = vld [vmem:[#allocation6 + $0x568] sm:$0xf]  ;;  %v4390_v22 = vld [vmem:[#allocation6 + $0x574] sm:$0xf0]  ;;  %v3271_v13 = vld [vmem:[#allocation6 + $0x2f8] sm:$0xf0] }
  0xb7   :  { %1930 = vmatpush.bf16.msra.mxu3 %v3046_v9  ;;  %v3861_v9 = vld [vmem:[#allocation6 + $0x788] sm:$0xf]  ;;  %v4454_v24 = vld [vmem:[#allocation6 + $0x774] sm:$0xf0] }
  0xb8   :  { %1944 = vmatpush.bf16.msra.mxu0 %v3174_v25  ;;  %v3862_v15 = vor.u32 %v4458_v10, %v3861_v9  ;;  %v3461_v25 = vld [vmem:[#allocation6 + $0x468] sm:$0xf]  ;;  %v4358_v26 = vld [vmem:[#allocation6 + $0x474] sm:$0xf0]  ;;  %v3143_v10 = vld [vmem:[#allocation6 + $0x1f8] sm:$0xf0] }
  0xb9   :  { %1958 = vmatpush.bf16.msra.mxu1 %v3302_v29  ;;  %v3846_v29 = vor.u32 %v4454_v24, %v3845_v23  ;;  %v3573_v30 = vld [vmem:[#allocation6 + $0x548] sm:$0xf]  ;;  %v4422_v32 = vld [vmem:[#allocation6 + $0x674] sm:$0xf0]  ;;  %v3462_v33 = vor.u32 %v4358_v26, %v3461_v25  ;;  %v3146_v23 = vor.u32 %v4276_v8, %v3143_v10  ;;  %v3274_v24 = vor.u32 %v4308_v11, %v3271_v13  ;;  %v4240_v25 = vld [vmem:[#allocation6 + $0xcc] sm:$0xf] }
  0xba   :  { %1917 = vmatpush.bf16.msra.mxu2 %v2902_v34  ;;  %v3717_v31 = vld [vmem:[#allocation6 + $0x668] sm:$0xf]  ;;  %v4386_v34 = vld [vmem:[#allocation6 + $0x554] sm:$0xf0]  ;;  %v2999_v26 = vld [vmem:[#allocation6 + $0xd8] sm:$0xf0] }
  0xbb   :  { %1931 = vmatpush.bf16.msra.mxu3 %v3030_v28  ;;  %v3590_v28 = vor.u32 %v4390_v22, %v3589_v16  ;;  %v4450_v36 = vld [vmem:[#allocation6 + $0x754] sm:$0xf0]  ;;  %v3445_v37 = vld [vmem:[#allocation6 + $0x448] sm:$0xf]  ;;  %v3574_v40 = vor.u32 %v4386_v34, %v3573_v30  ;;  %v3399_v22 = vld [vmem:[#allocation6 + $0x3f8] sm:$0xf0] }
  0xbc   :  { %1945 = vmatpush.bf16.msra.mxu0 %v3158_v42  ;;  %v4354_v38 = vld [vmem:[#allocation6 + $0x454] sm:$0xf0]  ;;  %v3557_v42 = vld [vmem:[#allocation6 + $0x528] sm:$0xf]  ;;  %v4304_v30 = vld [vmem:[#allocation6 + $0x2cc] sm:$0xf] }
  0xbd   :  { %1959 = vmatpush.bf16.msra.mxu1 %v3286_v47  ;;  %1918 = vmatmul.bf16.vlgmr.msra.gmra.mxu2 %v4800_v60  ;;  %v3701_v43 = vld [vmem:[#allocation6 + $0x648] sm:$0xf]  ;;  %v4418_v44 = vld [vmem:[#allocation6 + $0x654] sm:$0xf0]  ;;  %v3446_v47 = vor.u32 %v4354_v38, %v3445_v37  ;;  %v4336_v34 = vld [vmem:[#allocation6 + $0x3cc] sm:$0xf] }
  0xbe   :  { %1966 = vmatpush.bf16.msrb.mxu2 %v3526_v39  ;;  %1932 = vmatmul.bf16.vlgmr.msra.gmra.mxu3 %v4806_v12  ;;  %v3718_v39 = vor.u32 %v4422_v32, %v3717_v31  ;;  %v3429_v53 = vld [vmem:[#allocation6 + $0x428] sm:$0xf]  ;;  %v4350_v54 = vld [vmem:[#allocation6 + $0x434] sm:$0xf0]  ;;  %v3702_v55 = vor.u32 %v4418_v44, %v3701_v43  ;;  %v3255_v31 = vld [vmem:[#allocation6 + $0x2d8] sm:$0xf0] }
  0xbf   :  { %1980 = vmatpush.bf16.msrb.mxu3 %v3654_v35  ;;  %1946 = vmatmul.bf16.vlgmr.msra.gmra.mxu0 %v4802_v3  ;;  %v3829_v35 = vld [vmem:[#allocation6 + $0x748] sm:$0xf]  ;;  %v4346_v59 = vld [vmem:[#allocation6 + $0x414] sm:$0xf0]  ;;  %v3258_v37 = vor.u32 %v4304_v30, %v3255_v31  ;;  %v4236_v38 = vld [vmem:[#allocation6 + $0xac] sm:$0xf] }
  0xc0   :  { %1994 = vmatpush.bf16.msrb.mxu0 %v3782_v48  ;;  %1960 = vmatmul.bf16.vlgmr.msra.gmra.mxu1 %v4808_v19  ;;  %v3830_v41 = vor.u32 %v4450_v36, %v3829_v35  ;;  %v4382_v48 = vld [vmem:[#allocation6 + $0x534] sm:$0xf0]  ;;  %v3413_v58 = vld [vmem:[#allocation6 + $0x408] sm:$0xf]  ;;  %v3383_v35 = vld [vmem:[#allocation6 + $0x3d8] sm:$0xf0] }
  0xc1   :  { %2009 = vmatpush.bf16.msrb.mxu1 %v1681_v49  ;;  %v3813_v49 = vld [vmem:[#allocation6 + $0x728] sm:$0xf]  ;;  %v4442_v4 = vld [vmem:[#allocation6 + $0x714] sm:$0xf0]  ;;  %v3414_v17 = vor.u32 %v4346_v59, %v3413_v58  ;;  %v3239_v43 = vld [vmem:[#allocation6 + $0x2b8] sm:$0xf0]  ;;  %v3386_v44 = vor.u32 %v4336_v34, %v3383_v35 }
  0xc2   :  { %1967 = vmatpush.bf16.msrb.mxu2 %v3510_v56  ;;  %v3558_v56 = vor.u32 %v4382_v48, %v3557_v42  ;;  %v3541_v61 = vld [vmem:[#allocation6 + $0x508] sm:$0xf]  ;;  %v4410_v16 = vld [vmem:[#allocation6 + $0x614] sm:$0xf0]  ;;  %v4300_v42 = vld [vmem:[#allocation6 + $0x2ac] sm:$0xf] }
  0xc3   :  { %1981 = vmatpush.bf16.msrb.mxu3 %v3638_v52  ;;  %v4446_v52 = vld [vmem:[#allocation6 + $0x734] sm:$0xf0]  ;;  %v3685_v62 = vld [vmem:[#allocation6 + $0x628] sm:$0xf]  ;;  %v4332_v48 = vld [vmem:[#allocation6 + $0x3ac] sm:$0xf] }
  0xc4   :  { %1995 = vmatpush.bf16.msrb.mxu0 %v3766_v63  ;;  %v3814_v57 = vor.u32 %v4446_v52, %v3813_v49  ;;  %v4414_v63 = vld [vmem:[#allocation6 + $0x634] sm:$0xf0]  ;;  %v3797_v2 = vld [vmem:[#allocation6 + $0x708] sm:$0xf]  ;;  %v3367_v49 = vld [vmem:[#allocation6 + $0x3b8] sm:$0xf0]  ;;  %v4849_v8 = vpop.f32.mrf.mxu0 }
  0xc5   :  { %2010 = vmatpush.bf16.msrb.mxu1 %v3878_v1  ;;  %v4378_v1 = vld [vmem:[#allocation6 + $0x514] sm:$0xf0]  ;;  %v3686_v9 = vor.u32 %v4414_v63, %v3685_v62  ;;  %v4296_v58 = vld [vmem:[#allocation6 + $0x28c] sm:$0xf]  ;;  %v3223_v59 = vld [vmem:[#allocation6 + $0x298] sm:$0xf0] }
  0xc6   :  { %1968 = vmatpush.bf16.msrb.mxu2 %v3494_v7  ;;  %v3015_v7 = vld [vmem:[#allocation6 + $0xf8] sm:$0xf0]  ;;  %v4328_v63 = vld [vmem:[#allocation6 + $0x38c] sm:$0xf] }
  0xc7   :  { %1982 = vmatpush.bf16.msrb.mxu3 %v3622_v0  ;;  %v3430_v0 = vor.u32 %v4350_v54, %v3429_v53  ;;  %v3018_v18 = vor.u32 %v4244_v6, %v3015_v7  ;;  %v3242_v53 = vor.u32 %v4300_v42, %v3239_v43  ;;  %v4232_v54 = vld [vmem:[#allocation6 + $0x8c] sm:$0xf]  ;;  %v2951_v6 = vld [vmem:[#allocation6 + $0x78] sm:$0xf0] }
  0xc8   :  { %1996 = vmatpush.bf16.msrb.mxu0 %v3750_v20  ;;  %v3542_v20 = vor.u32 %v4378_v1, %v3541_v61  ;;  %v3370_v61 = vor.u32 %v4332_v48, %v3367_v49  ;;  %v4260_v7 = vld [vmem:[#allocation6 + $0x16c] sm:$0xf]  ;;  %v3207_v11 = vld [vmem:[#allocation6 + $0x278] sm:$0xf0] }
  0xc9   :  { %2011 = vmatpush.bf16.msrb.mxu1 %v3862_v15  ;;  %v3669_v15 = vld [vmem:[#allocation6 + $0x608] sm:$0xf]  ;;  %v4292_v10 = vld [vmem:[#allocation6 + $0x26c] sm:$0xf]  ;;  %v2903_v49 = vld [vmem:[#allocation6 + $0x18] sm:$0xf0] }
  0xca   :  { %1969 = vmatpush.bf16.msrb.mxu2 %v3478_v21  ;;  %v4340_v21 = vld [vmem:[#allocation6 + $0x3ec] sm:$0xf] }
  0xcb   :  { %1983 = vmatpush.bf16.msrb.mxu3 %v3606_v14  ;;  %v3798_v14 = vor.u32 %v4442_v4, %v3797_v2  ;;  %v3402_v32 = vor.u32 %v4340_v21, %v3399_v22  ;;  %v3226_v2 = vor.u32 %v4296_v58, %v3223_v59  ;;  %v4228_v4 = vld [vmem:[#allocation6 + $0x6c] sm:$0xf]  ;;  %v2935_v21 = vld [vmem:[#allocation6 + $0x58] sm:$0xf0] }
  0xcc   :  { %1997 = vmatpush.bf16.msrb.mxu0 %v3734_v27  ;;  %v4272_v27 = vld [vmem:[#allocation6 + $0x1cc] sm:$0xf]  ;;  %v3159_v59 = vld [vmem:[#allocation6 + $0x218] sm:$0xf0] }
  0xcd   :  { %2012 = vmatpush.bf16.msrb.mxu1 %v3846_v29  ;;  %v3127_v29 = vld [vmem:[#allocation6 + $0x1d8] sm:$0xf0]  ;;  %v4256_v22 = vld [vmem:[#allocation6 + $0x14c] sm:$0xf] }
  0xce   :  { %1970 = vmatpush.bf16.msrb.mxu2 %v3462_v33  ;;  %v3002_v33 = vor.u32 %v4240_v25, %v2999_v26  ;;  %v3130_v36 = vor.u32 %v4272_v27, %v3127_v29  ;;  %v4288_v25 = vld [vmem:[#allocation6 + $0x24c] sm:$0xf]  ;;  %v3191_v26 = vld [vmem:[#allocation6 + $0x258] sm:$0xf0]  ;;  %v4855_v29 = vpop.f32.mrf.mxu2 }
  0xcf   :  { %1984 = vmatpush.bf16.msrb.mxu3 %v3590_v28  ;;  %v3670_v28 = vor.u32 %v4410_v16, %v3669_v15  ;;  %v3335_v15 = vld [vmem:[#allocation6 + $0x378] sm:$0xf0]  ;;  %v4320_v31 = vld [vmem:[#allocation6 + $0x34c] sm:$0xf]  ;;  %v3194_v35 = vor.u32 %v4288_v25, %v3191_v26 }
  0xd0   :  { %1998 = vmatpush.bf16.msrb.mxu0 %v3718_v39  ;;  %v2983_v39 = vld [vmem:[#allocation6 + $0xb8] sm:$0xf0]  ;;  %v4280_v58 = vld [vmem:[#allocation6 + $0x20c] sm:$0xf] }
  0xd1   :  { %2013 = vmatpush.bf16.msrb.mxu1 %v3830_v41  ;;  %v3111_v41 = vld [vmem:[#allocation6 + $0x1b8] sm:$0xf0] }
  0xd2   :  { %1971 = vmatpush.bf16.msrb.mxu2 %v3446_v47  ;;  %v2986_v47 = vor.u32 %v4236_v38, %v2983_v39  ;;  %v4252_v38 = vld [vmem:[#allocation6 + $0x12c] sm:$0xf]  ;;  %v3047_v39 = vld [vmem:[#allocation6 + $0x138] sm:$0xf0] }
  0xd3   :  { %1985 = vmatpush.bf16.msrb.mxu3 %v3574_v40  ;;  %v4268_v40 = vld [vmem:[#allocation6 + $0x1ac] sm:$0xf]  ;;  %v3511_v26 = vld [vmem:[#allocation6 + $0x4d8] sm:$0xf0] }
  0xd4   :  { %1999 = vmatpush.bf16.msrb.mxu0 %v3702_v55  ;;  %v3114_v52 = vor.u32 %v4268_v40, %v3111_v41  ;;  %v2967_v55 = vld [vmem:[#allocation6 + $0x98] sm:$0xf0]  ;;  %v4284_v40 = vld [vmem:[#allocation6 + $0x22c] sm:$0xf] }
  0xd5   :  { %2014 = vmatpush.bf16.msrb.mxu1 %v3814_v57  ;;  %v3095_v57 = vld [vmem:[#allocation6 + $0x198] sm:$0xf0]  ;;  %v2970_v62 = vor.u32 %v4232_v54, %v2967_v55  ;;  %v3050_v54 = vor.u32 %v4252_v38, %v3047_v39 }
  0xd6   :  { %1972 = vmatpush.bf16.msrb.mxu2 %v3430_v0  ;;  %v3351_v0 = vld [vmem:[#allocation6 + $0x398] sm:$0xf0] }
  0xd7   :  { %1986 = vmatpush.bf16.msrb.mxu3 %v3558_v56  ;;  %v4264_v56 = vld [vmem:[#allocation6 + $0x18c] sm:$0xf]  ;;  %v3354_v13 = vor.u32 %v4328_v63, %v3351_v0  ;;  %v3175_v41 = vld [vmem:[#allocation6 + $0x238] sm:$0xf0] }
  0xd8   :  { %2000 = vmatpush.bf16.msrb.mxu0 %v3686_v9  ;;  %v3098_v1 = vor.u32 %v4264_v56, %v3095_v57  ;;  %v3079_v9 = vld [vmem:[#allocation6 + $0x178] sm:$0xf0]  ;;  %v3178_v55 = vor.u32 %v4284_v40, %v3175_v41  ;;  %v4248_v56 = vld [vmem:[#allocation6 + $0x10c] sm:$0xf] }
  0xd9   :  { %2015 = vmatpush.bf16.msrb.mxu1 %v3798_v14  ;;  %v4324_v14 = vld [vmem:[#allocation6 + $0x36c] sm:$0xf]  ;;  %v3082_v16 = vor.u32 %v4260_v7, %v3079_v9  ;;  %v3031_v57 = vld [vmem:[#allocation6 + $0x118] sm:$0xf0] }
  0xda   :  { %1973 = vmatpush.bf16.msrb.mxu2 %v3414_v17  ;;  %v3210_v17 = vor.u32 %v4292_v10, %v3207_v11  ;;  %v3338_v27 = vor.u32 %v4324_v14, %v3335_v15  ;;  %v4404_v0 = vld [vmem:[#allocation6 + $0x5ec] sm:$0xf]  ;;  %v3783_v7 = vld [vmem:[#allocation6 + $0x6f8] sm:$0xf0]  ;;  %v3034_v11 = vor.u32 %v4248_v56, %v3031_v57  ;;  %v1725_v15 = vpop.f32.mrf.mxu2 }
  0xdb   :  { %1987 = vmatpush.bf16.msrb.mxu3 %v3542_v20  ;;  %v2954_v20 = vor.u32 %v4228_v4, %v2951_v6  ;;  %v4312_v9 = vld [vmem:[#allocation6 + $0x30c] sm:$0xf]  ;;  %v3287_v10 = vld [vmem:[#allocation6 + $0x318] sm:$0xf0] }
  0xdc   :  { %2001 = vmatpush.bf16.msrb.mxu0 %v3670_v28  ;;  %3885 = vmatmul.msk.bf16.vlgmr.msrb.gmra.mxu1 %vm1669_vm1, %v4818_v51  ;;  %v4853_v28 = vld [vmem:[#allocation8] sm:$0xf]  ;;  %v4478_v14 = vld [vmem:[#allocation9 + $0x74] sm:$0xf0]  ;;  %v3290_v25 = vor.u32 %v4312_v9, %v3287_v10 }
  0xdd   :  { %2022 = vmatpush.bf16.msra.mxu1 %v3018_v18  ;;  %1974 = vmatmul.bf16.vlgmr.msrb.gmra.mxu2 %v4812_v45  ;;  %v4224_v18 = vld [vmem:[#allocation6 + $0x4c] sm:$0xf]  ;;  %v372_v42 = vperm.slane %v4853_v28, 0 }
  0xde   :  { %2036 = vmatpush.bf16.msra.mxu2 %v3146_v23  ;;  %1988 = vmatmul.bf16.vlgmr.msrb.gmra.mxu3 %v4816_v50  ;;  %v4851_v23 = vpop.f32.mrf.mxu1  ;;  %v2938_v30 = vor.u32 %v4224_v18, %v2935_v21  ;;  %v4368_v18 = vld [vmem:[#allocation6 + $0x4cc] sm:$0xf] }
  0xdf   :  { %2050 = vmatpush.bf16.msra.mxu3 %v3274_v24  ;;  %2002 = vmatmul.bf16.vlgmr.msrb.gmra.mxu0 %v4814_v46  ;;  %v3063_v24 = vld [vmem:[#allocation6 + $0x158] sm:$0xf0]  ;;  %v1696_v21 = vadd.f32 %v4849_v8, %v372_v42  ;;  %v3514_v8 = vor.u32 %v4368_v18, %v3511_v26  ;;  %v4364_v40 = vld [vmem:[#allocation6 + $0x4ac] sm:$0xf] }
  0xe0   :  { %2064 = vmatpush.bf16.msra.mxu0 %v3402_v32  ;;  %v3319_v32 = vld [vmem:[#allocation6 + $0x358] sm:$0xf0]  ;;  %v3066_v34 = vor.u32 %v4256_v22, %v3063_v24  ;;  %v4356_v10 = vld [vmem:[#allocation6 + $0x46c] sm:$0xf] }
  0xe1   :  { %2023 = vmatpush.bf16.msra.mxu1 %v3002_v33  ;;  %v4857_v33 = vpop.f32.mrf.mxu3  ;;  %v3322_v43 = vor.u32 %v4320_v31, %v3319_v32  ;;  %v4432_v31 = vld [vmem:[#allocation6 + $0x6cc] sm:$0xf]  ;;  %v3767_v32 = vld [vmem:[#allocation6 + $0x6d8] sm:$0xf0]  ;;  %v1710_v41 = vadd.f32 %v4851_v23, %v1696_v21 }
  0xe2   :  { %2037 = vmatpush.bf16.msra.mxu2 %v3130_v36  ;;  %v4220_v36 = vld [vmem:[#allocation6 + $0x2c] sm:$0xf] }
  0xe3   :  { %2051 = vmatpush.bf16.msra.mxu3 %v3258_v37  ;;  %v2919_v37 = vld [vmem:[#allocation6 + $0x38] sm:$0xf0] }
  0xe4   :  { %2065 = vmatpush.bf16.msra.mxu0 %v3386_v44  ;;  %v4216_v44 = vld [vmem:[#allocation6 + $0xc] sm:$0xf]  ;;  %v2922_v48 = vor.u32 %v4220_v36, %v2919_v37  ;;  %v3937_v36 = vld [vmem:[#allocation9 + $0x60] sm:$0xf]  ;;  %v4476_v37 = vld [vmem:[#allocation9 + $0x64] sm:$0xf0] }
  0xe5   :  { %2024 = vmatpush.bf16.msra.mxu1 %v2986_v47  ;;  %v1697_v47 = vpop.f32.mrf.mxu0  ;;  %v2906_v6 = vor.u32 %v4216_v44, %v2903_v49  ;;  %v3495_v44 = vld [vmem:[#allocation6 + $0x4b8] sm:$0xf0] }
  0xe6   :  { %2038 = vmatpush.bf16.msra.mxu2 %v3114_v52  ;;  %v4316_v52 = vld [vmem:[#allocation6 + $0x32c] sm:$0xf]  ;;  %v1711_v4 = vpop.f32.mrf.mxu1  ;;  %v3623_v49 = vld [vmem:[#allocation6 + $0x5b8] sm:$0xf0]  ;;  %v3498_v56 = vor.u32 %v4364_v40, %v3495_v44  ;;  %v3905_v40 = vld [vmem:[#allocation9 + $0x20] sm:$0xf] }
  0xe7   :  { %2052 = vmatpush.bf16.msra.mxu3 %v3242_v53  ;;  %v3303_v53 = vld [vmem:[#allocation6 + $0x338] sm:$0xf0] }
  0xe8   :  { %2066 = vmatpush.bf16.msra.mxu0 %v3370_v61  ;;  %v4372_v61 = vld [vmem:[#allocation6 + $0x4ec] sm:$0xf]  ;;  %v3306_v63 = vor.u32 %v4316_v52, %v3303_v53  ;;  %v3938_v52 = vor.u32 %v4476_v37, %v3937_v36  ;;  %v3575_v36 = vld [vmem:[#allocation6 + $0x558] sm:$0xf0] }
  0xe9   :  { %2025 = vmatpush.bf16.msra.mxu1 %v2970_v62  ;;  %v3527_v62 = vld [vmem:[#allocation6 + $0x4f8] sm:$0xf0]  ;;  %v4861_v22 = vpop.f32.mrf.mxu3 }
  0xea   :  { %2039 = vmatpush.bf16.msra.mxu2 %v3098_v1  ;;  %v3655_v1 = vld [vmem:[#allocation6 + $0x5f8] sm:$0xf0] }
  0xeb   :  { %2053 = vmatpush.bf16.msra.mxu3 %v3226_v2  ;;  %v4436_v2 = vld [vmem:[#allocation6 + $0x6ec] sm:$0xf] }
  0xec   :  { %2067 = vmatpush.bf16.msra.mxu0 %v3354_v13  ;;  %v3162_v13 = vor.u32 %v4280_v58, %v3159_v59  ;;  %v3786_v24 = vor.u32 %v4436_v2, %v3783_v7  ;;  %v4360_v58 = vld [vmem:[#allocation6 + $0x48c] sm:$0xf]  ;;  %v1724_v59 = vadd.f32 %v4855_v29, %v1710_v41  ;;  %v4472_v7 = vld [vmem:[#allocation9 + $0x44] sm:$0xf0] }
  0xed   :  { %2026 = vmatpush.bf16.msra.mxu1 %v2954_v20  ;;  %v3945_v20 = vld [vmem:[#allocation9 + $0x70] sm:$0xf]  ;;  %v4863_v38 = vpop.f32.mrf.mxu0  ;;  %v4468_v41 = vld [vmem:[#allocation9 + $0x24] sm:$0xf0] }
  0xee   :  { %2040 = vmatpush.bf16.msra.mxu2 %v3082_v16  ;;  %v3530_v16 = vor.u32 %v4372_v61, %v3527_v62  ;;  %v4869_v23 = vpop.f32.mrf.mxu1  ;;  %v3479_v62 = vld [vmem:[#allocation6 + $0x498] sm:$0xf0] }
  0xef   :  { %2054 = vmatpush.bf16.msra.mxu3 %v3210_v17  ;;  %v3658_v17 = vor.u32 %v4404_v0, %v3655_v1  ;;  %v4873_v0 = vpop.f32.mrf.mxu2  ;;  %v3482_v29 = vor.u32 %v4360_v58, %v3479_v62  ;;  %v3906_v58 = vor.u32 %v4468_v41, %v3905_v40  ;;  %v4466_v62 = vld [vmem:[#allocation9 + $0x14] sm:$0xf0]  ;;  %v4475_v40 = vld [vmem:[#allocation9 + $0x64] sm:$0xf]  ;;  %v3939_v41 = vld [vmem:[#allocation9 + $0x68] sm:$0xf0] }
  0xf0   :  { %2068 = vmatpush.bf16.msra.mxu0 %v3338_v27  ;;  %v4400_v27 = vld [vmem:[#allocation6 + $0x5cc] sm:$0xf] }
  0xf1   :  { %2027 = vmatpush.bf16.msra.mxu1 %v2938_v30  ;;  %v3639_v30 = vld [vmem:[#allocation6 + $0x5d8] sm:$0xf0] }
  0xf2   :  { %2041 = vmatpush.bf16.msra.mxu2 %v3066_v34  ;;  %v3946_v34 = vor.u32 %v4478_v14, %v3945_v20  ;;  %v3642_v39 = vor.u32 %v4400_v27, %v3639_v30  ;;  %v4388_v20 = vld [vmem:[#allocation6 + $0x56c] sm:$0xf]  ;;  %v3591_v14 = vld [vmem:[#allocation6 + $0x578] sm:$0xf0] }
  0xf3   :  { %2055 = vmatpush.bf16.msra.mxu3 %v3194_v35  ;;  %v1698_v35 = vadd.f32 %v1697_v47, %v372_v42  ;;  %v4428_v42 = vld [vmem:[#allocation6 + $0x6ac] sm:$0xf]  ;;  %v3751_v47 = vld [vmem:[#allocation6 + $0x6b8] sm:$0xf0]  ;;  %v3594_v27 = vor.u32 %v4388_v20, %v3591_v14  ;;  %v3889_v14 = vld [vmem:[#allocation9] sm:$0xf] }
  0xf4   :  { %2069 = vmatpush.bf16.msra.mxu0 %v3322_v43  ;;  %v3770_v43 = vor.u32 %v4432_v31, %v3767_v32  ;;  %v3754_v61 = vor.u32 %v4428_v42, %v3751_v47  ;;  %v4352_v30 = vld [vmem:[#allocation6 + $0x44c] sm:$0xf] }
  0xf5   :  { %2028 = vmatpush.bf16.msra.mxu1 %v2922_v48  ;;  %v4396_v48 = vld [vmem:[#allocation6 + $0x5ac] sm:$0xf]  ;;  %v1712_v53 = vadd.f32 %v1711_v4, %v1698_v35  ;;  %v4875_v4 = vpop.f32.mrf.mxu3 }
  0xf6   :  { %2042 = vmatpush.bf16.msra.mxu2 %v3050_v54  ;;  %v3929_v54 = vld [vmem:[#allocation9 + $0x50] sm:$0xf]  ;;  %v3626_v57 = vor.u32 %v4396_v48, %v3623_v49  ;;  %v4384_v35 = vld [vmem:[#allocation6 + $0x54c] sm:$0xf]  ;;  %v1767_v37 = vpop.f32.mrf.mxu1 }
  0xf7   :  { %2056 = vmatpush.bf16.msra.mxu3 %v3178_v55  ;;  %v4474_v55 = vld [vmem:[#allocation9 + $0x54] sm:$0xf0]  ;;  %v1726_v2 = vadd.f32 %v1725_v15, %v1712_v53  ;;  %v3719_v15 = vld [vmem:[#allocation6 + $0x678] sm:$0xf0]  ;;  %v3578_v48 = vor.u32 %v4384_v35, %v3575_v36 }
  0xf8   :  { %2070 = vmatpush.bf16.msra.mxu0 %v3306_v63  ;;  %v3607_v63 = vld [vmem:[#allocation6 + $0x598] sm:$0xf0]  ;;  %v3930_v1 = vor.u32 %v4474_v55, %v3929_v54  ;;  %v4348_v49 = vld [vmem:[#allocation6 + $0x42c] sm:$0xf] }
  0xf9   :  { %2029 = vmatpush.bf16.msra.mxu1 %v2906_v6  ;;  %v3921_v6 = vld [vmem:[#allocation9 + $0x40] sm:$0xf]  ;;  %v1740_v21 = vadd.f32 %v4861_v22, %v1726_v2  ;;  %v3431_v53 = vld [vmem:[#allocation6 + $0x438] sm:$0xf0]  ;;  %v4380_v54 = vld [vmem:[#allocation6 + $0x52c] sm:$0xf] }
  0xfa   :  { %2043 = vmatpush.bf16.msra.mxu2 %v3034_v11  ;;  %v1738_v11 = vadd.f32 %v4857_v33, %v1724_v59  ;;  %v3922_v18 = vor.u32 %v4472_v7, %v3921_v6  ;;  %v3559_v55 = vld [vmem:[#allocation6 + $0x538] sm:$0xf0]  ;;  %v4376_v6 = vld [vmem:[#allocation6 + $0x50c] sm:$0xf] }
  0xfb   :  { %2057 = vmatpush.bf16.msra.mxu3 %v3162_v13  ;;  %v3463_v13 = vld [vmem:[#allocation6 + $0x478] sm:$0xf0]  ;;  %v4460_v36 = vld [vmem:[#allocation6 + $0x7ac] sm:$0xf] }
  0xfc   :  { %2071 = vmatpush.bf16.msra.mxu0 %v3290_v25  ;;  %2030 = vmatmul.bf16.vlgmr.msra.gmra.mxu1 %v4800_v60  ;;  %v4424_v60 = vld [vmem:[#allocation6 + $0x68c] sm:$0xf]  ;;  %v3466_v26 = vor.u32 %v4356_v10, %v3463_v13  ;;  %v1752_v33 = vadd.f32 %v4863_v38, %v1738_v11  ;;  %v3543_v7 = vld [vmem:[#allocation6 + $0x518] sm:$0xf0]  ;;  %v4009_v11 = vld [vmem:[#allocation9 + $0xf0] sm:$0xf] }
  0xfd   :  { %2078 = vmatpush.bf16.msrb.mxu1 %v3530_v16  ;;  %2044 = vmatmul.bf16.vlgmr.msra.gmra.mxu2 %v4806_v12  ;;  %v4392_v12 = vld [vmem:[#allocation6 + $0x58c] sm:$0xf]  ;;  %v1753_v16 = vpop.f32.mrf.mxu0  ;;  %v1795_v47 = vpop.f32.mrf.mxu3 }
  0xfe   :  { %2092 = vmatpush.bf16.msrb.mxu2 %v3658_v17  ;;  %2058 = vmatmul.bf16.vlgmr.msra.gmra.mxu3 %v4802_v3  ;;  %v3735_v3 = vld [vmem:[#allocation6 + $0x698] sm:$0xf0]  ;;  %v3610_v9 = vor.u32 %v4392_v12, %v3607_v63  ;;  %v4420_v17 = vld [vmem:[#allocation6 + $0x66c] sm:$0xf]  ;;  %v1754_v31 = vadd.f32 %v1753_v16, %v1740_v21  ;;  %v1766_v38 = vadd.f32 %v4869_v23, %v1752_v33  ;;  %v1168_v12 = vunpack.c.h.b16 %v4836_v5 }
  0xff   :  { %2106 = vmatpush.bf16.msrb.mxu3 %v3786_v24  ;;  %2072 = vmatmul.bf16.vlgmr.msra.gmra.mxu0 %v4808_v19  ;;  %v3738_v19 = vor.u32 %v4424_v60, %v3735_v3  ;;  %v3913_v24 = vld [vmem:[#allocation9 + $0x30] sm:$0xf]  ;;  %v4470_v25 = vld [vmem:[#allocation9 + $0x34] sm:$0xf0]  ;;  %v3722_v32 = vor.u32 %v4420_v17, %v3719_v15  ;;  %v3434_v63 = vor.u32 %v4348_v49, %v3431_v53  ;;  %v3415_v3 = vld [vmem:[#allocation6 + $0x418] sm:$0xf0] }
 0x100   :  { %2536 = vmatpush.bf16.msrb.mxu0 %v3946_v34  ;;  %v3447_v34 = vld [vmem:[#allocation6 + $0x458] sm:$0xf0]  ;;  %v3914_v22 = vor.u32 %v4470_v25, %v3913_v24  ;;  %v1768_v42 = vadd.f32 %v1767_v37, %v1754_v31  ;;  %v3562_v23 = vor.u32 %v4380_v54, %v3559_v55  ;;  %v4344_v60 = vld [vmem:[#allocation6 + $0x40c] sm:$0xf]  ;;  %v1420_v5 = vpack.c.b16 %v1168_v12, %v1168_v12  ;;  %v4477_v25 = vld [vmem:[#allocation9 + $0x74] sm:$0xf] }
 0x101   :  { %2079 = vmatpush.bf16.msrb.mxu1 %v3514_v8  ;;  %v4416_v8 = vld [vmem:[#allocation6 + $0x64c] sm:$0xf]  ;;  %v3450_v44 = vor.u32 %v4352_v30, %v3447_v34  ;;  %v4464_v16 = vld [vmem:[#allocation9 + $0x4] sm:$0xf0]  ;;  %v3418_v17 = vor.u32 %v4344_v60, %v3415_v3  ;;  %v3546_v15 = vor.u32 %v4376_v6, %v3543_v7  ;;  %v373_v30 = vperm.slane %v4853_v28, 1 }
 0x102   :  { %2093 = vmatpush.bf16.msrb.mxu2 %v3642_v39  ;;  %v3703_v39 = vld [vmem:[#allocation6 + $0x658] sm:$0xf0]  ;;  %v3890_v33 = vor.u32 %v4464_v16, %v3889_v14  ;;  %v4001_v31 = vld [vmem:[#allocation9 + $0xe0] sm:$0xf]  ;;  %v1684_v35 = vsel %vm1673_vm0, %v1420_v5, 0 }
 0x103   :  { %2107 = vmatpush.bf16.msrb.mxu3 %v3770_v43  ;;  %v1781_v43 = vpop.f32.mrf.mxu2  ;;  %v3879_v37 = vld [vmem:[#allocation6 + $0x7b8] sm:$0xf0]  ;;  %v4490_v49 = vld [vmem:[#allocation9 + $0xd4] sm:$0xf0]  ;;  %v4473_v55 = vld [vmem:[#allocation9 + $0x54] sm:$0xf] }
 0x104   :  { %2537 = vmatpush.bf16.msrb.mxu0 %v3938_v52  ;;  %v3706_v52 = vor.u32 %v4416_v8, %v3703_v39  ;;  %v1782_v59 = vadd.f32 %v1781_v43, %v1768_v42  ;;  %v4456_v42 = vld [vmem:[#allocation6 + $0x78c] sm:$0xf]  ;;  %v3923_v60 = vld [vmem:[#allocation9 + $0x48] sm:$0xf0]  ;;  %v3915_v5 = vld [vmem:[#allocation9 + $0x38] sm:$0xf0] }
 0x105   :  { %2080 = vmatpush.bf16.msrb.mxu1 %v3498_v56  ;;  %v4412_v56 = vld [vmem:[#allocation6 + $0x62c] sm:$0xf]  ;;  %v1821_v20 = vpop.f32.mrf.mxu0  ;;  %v1807_v24 = vpop.f32.mrf.mxu3  ;;  %v3969_v16 = vld [vmem:[#allocation9 + $0xa0] sm:$0xf] }
 0x106   :  { %2094 = vmatpush.bf16.msrb.mxu2 %v3626_v57  ;;  %v3687_v57 = vld [vmem:[#allocation6 + $0x638] sm:$0xf0]  ;;  %v1796_v13 = vadd.f32 %v1795_v47, %v1782_v59  ;;  %v1808_v43 = vadd.f32 %v1807_v24, %v373_v30  ;;  %v3985_v59 = vld [vmem:[#allocation9 + $0xc0] sm:$0xf]  ;;  %v4486_v6 = vld [vmem:[#allocation9 + $0xb4] sm:$0xf0] }
 0x107   :  { %2108 = vmatpush.bf16.msrb.mxu3 %v3754_v61  ;;  %v3897_v61 = vld [vmem:[#allocation9 + $0x10] sm:$0xf]  ;;  %v3690_v2 = vor.u32 %v4412_v56, %v3687_v57  ;;  %v3863_v47 = vld [vmem:[#allocation6 + $0x798] sm:$0xf0]  ;;  %v3931_v56 = vld [vmem:[#allocation9 + $0x58] sm:$0xf0] }
 0x108   :  { %2538 = vmatpush.bf16.msrb.mxu0 %v3930_v1  ;;  %v1780_v1 = vadd.f32 %v4873_v0, %v1766_v38  ;;  %v3898_v10 = vor.u32 %v4466_v62, %v3897_v61  ;;  %v2138_v34 = vmax.f32 %v1796_v13, 0.0  ;;  %v1822_v57 = vadd.f32 %v1821_v20, %v1808_v43  ;;  %v3847_v62 = vld [vmem:[#allocation6 + $0x778] sm:$0xf0]  ;;  %v4469_v13 = vld [vmem:[#allocation9 + $0x34] sm:$0xf] }
 0x109   :  { %2081 = vmatpush.bf16.msrb.mxu1 %v3482_v29  ;;  %v4408_v29 = vld [vmem:[#allocation6 + $0x60c] sm:$0xf]  ;;  %v3918_v24 = vor.u32 %v4469_v13, %v3915_v5  ;;  %v4504_v13 = vld [vmem:[#allocation9 + $0x144] sm:$0xf0] }
 0x10a   :  { %2095 = vmatpush.bf16.msrb.mxu2 %v3610_v9  ;;  %v3671_v9 = vld [vmem:[#allocation6 + $0x618] sm:$0xf0]  ;;  %v1794_v0 = vadd.f32 %v4875_v4, %v1780_v1 }
 0x10b   :  { %2109 = vmatpush.bf16.msrb.mxu3 %v3738_v19  ;;  %v4494_v19 = vld [vmem:[#allocation9 + $0xf4] sm:$0xf0] }
 0x10c   :  { %2539 = vmatpush.bf16.msrb.mxu0 %v3922_v18  ;;  %v3674_v18 = vor.u32 %v4408_v29, %v3671_v9  ;;  %v4010_v21 = vor.u32 %v4494_v19, %v4009_v11  ;;  %v2134_v8 = vmax.f32 %v1794_v0, 0.0  ;;  %v4448_v29 = vld [vmem:[#allocation6 + $0x74c] sm:$0xf]  ;;  %v3831_v9 = vld [vmem:[#allocation6 + $0x758] sm:$0xf0] }
 0x10d   :  { %2082 = vmatpush.bf16.msrb.mxu1 %v3466_v26  ;;  %v3947_v26 = vld [vmem:[#allocation9 + $0x78] sm:$0xf0]  ;;  %v1823_v54 = vpop.f32.mrf.mxu0  ;;  %v1809_v61 = vpop.f32.mrf.mxu3  ;;  %v3834_v14 = vor.u32 %v4448_v29, %v3831_v9  ;;  %v4444_v0 = vld [vmem:[#allocation6 + $0x72c] sm:$0xf] }
 0x10e   :  { %2096 = vmatpush.bf16.msrb.mxu2 %v3594_v27  ;;  %v1835_v27 = vpop.f32.mrf.mxu1  ;;  %v3950_v4 = vor.u32 %v4477_v25, %v3947_v26  ;;  %v4886_v38 = vpack.c.bf16 %v2138_v34, %v2134_v8  ;;  %v3799_v8 = vld [vmem:[#allocation6 + $0x718] sm:$0xf0] }
 0x10f   :  { %2110 = vmatpush.bf16.msrb.mxu3 %v3722_v32  ;;  %v4492_v32 = vld [vmem:[#allocation9 + $0xe4] sm:$0xf0]  ;;  %v1836_v3 = vadd.f32 %v1835_v27, %v1822_v57 }
 0x110   :  { %2540 = vmatpush.bf16.msrb.mxu0 %v3914_v22  ;;  %v4002_v39 = vor.u32 %v4492_v32, %v4001_v31  ;;  %v1849_v22 = vpop.f32.mrf.mxu2  ;;  %v3907_v31 = vld [vmem:[#allocation9 + $0x28] sm:$0xf0] }
 0x111   :  { %2083 = vmatpush.bf16.msrb.mxu1 %v3450_v44  ;;  %v3882_v44 = vor.u32 %v4460_v36, %v3879_v37  ;;  %v1850_v20 = vadd.f32 %v1849_v22, %v1836_v3  ;;  %v4073_v36 = vld [vmem:[#allocation9 + $0x170] sm:$0xf]  ;;  %v4510_v37 = vld [vmem:[#allocation9 + $0x174] sm:$0xf0]  ;;  %v4003_v3 = vld [vmem:[#allocation9 + $0xe8] sm:$0xf0] }
 0x112   :  { %2097 = vmatpush.bf16.msrb.mxu2 %v3578_v48  ;;  %v3993_v48 = vld [vmem:[#allocation9 + $0xd0] sm:$0xf] }
 0x113   :  { %2111 = vmatpush.bf16.msrb.mxu3 %v3706_v52  ;;  %v3942_v52 = vor.u32 %v4475_v40, %v3939_v41  ;;  %v3994_v53 = vor.u32 %v4490_v49, %v3993_v48  ;;  %v4465_v48 = vld [vmem:[#allocation9 + $0x14] sm:$0xf]  ;;  %v3899_v49 = vld [vmem:[#allocation9 + $0x18] sm:$0xf0] }
 0x114   :  { %2541 = vmatpush.bf16.msrb.mxu0 %v3906_v58  ;;  %v3866_v58 = vor.u32 %v4456_v42, %v3863_v47 }
 0x115   :  { %2084 = vmatpush.bf16.msrb.mxu1 %v3434_v63 }
 0x116   :  { %2098 = vmatpush.bf16.msrb.mxu2 %v3562_v23  ;;  %v1837_v12 = vpop.f32.mrf.mxu1  ;;  %v4471_v23 = vld [vmem:[#allocation9 + $0x44] sm:$0xf] }
 0x117   :  { %2112 = vmatpush.bf16.msrb.mxu3 %v3690_v2  ;;  %v3977_v2 = vld [vmem:[#allocation9 + $0xb0] sm:$0xf]  ;;  %v3926_v11 = vor.u32 %v4471_v23, %v3923_v60 }
 0x118   :  { %2542 = vmatpush.bf16.msrb.mxu0 %v3898_v10  ;;  %v1851_v7 = vpop.f32.mrf.mxu2  ;;  %v1810_v10 = vadd.f32 %v1809_v61, %v373_v30  ;;  %v3978_v19 = vor.u32 %v4486_v6, %v3977_v2  ;;  %v3961_v30 = vld [vmem:[#allocation9 + $0x90] sm:$0xf]  ;;  %v4506_v2 = vld [vmem:[#allocation9 + $0x154] sm:$0xf0] }
 0x119   :  { %2085 = vmatpush.bf16.msrb.mxu1 %v3418_v17  ;;  %v4484_v17 = vld [vmem:[#allocation9 + $0xa4] sm:$0xf0] }
 0x11a   :  { %2099 = vmatpush.bf16.msrb.mxu2 %v3546_v15  ;;  %v3970_v26 = vor.u32 %v4484_v17, %v3969_v16  ;;  %v3995_v17 = vld [vmem:[#allocation9 + $0xd8] sm:$0xf0] }
 0x11b   :  { %2113 = vmatpush.bf16.msrb.mxu3 %v3674_v18  ;;  %v3815_v18 = vld [vmem:[#allocation6 + $0x738] sm:$0xf0] }
 0x11c   :  { %2543 = vmatpush.bf16.msrb.mxu0 %v3890_v33  ;;  %2086 = vmatmul.bf16.vlgmr.msrb.gmra.mxu1 %v4812_v45  ;;  %v4488_v45 = vld [vmem:[#allocation9 + $0xc4] sm:$0xf0]  ;;  %v1877_v15 = vpop.f32.mrf.mxu0  ;;  %v4467_v33 = vld [vmem:[#allocation9 + $0x24] sm:$0xf]  ;;  %v3818_v34 = vor.u32 %v4444_v0, %v3815_v18  ;;  %v4502_v0 = vld [vmem:[#allocation9 + $0x134] sm:$0xf0] }
 0x11d   :  { %2550 = vmatpush.bf16.msra.mxu1 %v4010_v21  ;;  %2100 = vmatmul.bf16.vlgmr.msrb.gmra.mxu2 %v4816_v50  ;;  %v4452_v50 = vld [vmem:[#allocation6 + $0x76c] sm:$0xf]  ;;  %v3986_v63 = vor.u32 %v4488_v45, %v3985_v59  ;;  %v1824_v21 = vadd.f32 %v1823_v54, %v1810_v10  ;;  %v3910_v40 = vor.u32 %v4467_v33, %v3907_v31  ;;  %v4508_v54 = vld [vmem:[#allocation9 + $0x164] sm:$0xf0] }
 0x11e   :  { %2114 = vmatmul.bf16.vlgmr.msrb.gmra.mxu3 %v4814_v46  ;;  %v3934_v46 = vor.u32 %v4473_v55, %v3931_v56  ;;  %v3850_v1 = vor.u32 %v4452_v50, %v3847_v62  ;;  %v1891_v27 = vpop.f32.mrf.mxu1  ;;  %v4493_v55 = vld [vmem:[#allocation9 + $0xf4] sm:$0xf]  ;;  %v4011_v56 = vld [vmem:[#allocation9 + $0xf8] sm:$0xf0]  ;;  %v3902_v59 = vor.u32 %v4465_v48, %v3899_v49  ;;  %v4463_v62 = vld [vmem:[#allocation9 + $0x4] sm:$0xf] }
 0x11f   :  { %2121 = vmatpush.bf16.msra.mxu3 %v1684_v35  ;;  %2544 = vmatmul.bf16.vlgmr.msrb.gmra.mxu0 %v4886_v38  ;;  %v4482_v35 = vld [vmem:[#allocation9 + $0x94] sm:$0xf0]  ;;  %v1838_v22 = vadd.f32 %v1837_v12, %v1824_v21  ;;  %v3891_v12 = vld [vmem:[#allocation9 + $0x8] sm:$0xf0]  ;;  %v4014_v60 = vor.u32 %v4493_v55, %v4011_v56  ;;  %v4500_v33 = vld [vmem:[#allocation9 + $0x124] sm:$0xf0] }
 0x120   :  { %2592 = vmatpush.bf16.msra.mxu0 %v3950_v4  ;;  %v4440_v4 = vld [vmem:[#allocation6 + $0x70c] sm:$0xf]  ;;  %v1905_v41 = vpop.f32.mrf.mxu2  ;;  %v3962_v43 = vor.u32 %v4482_v35, %v3961_v30  ;;  %v3894_v9 = vor.u32 %v4463_v62, %v3891_v12  ;;  %v4033_v30 = vld [vmem:[#allocation9 + $0x120] sm:$0xf]  ;;  %v4485_v35 = vld [vmem:[#allocation9 + $0xb4] sm:$0xf] }
 0x121   :  { %2551 = vmatpush.bf16.msra.mxu1 %v4002_v39  ;;  %v1863_v25 = vpop.f32.mrf.mxu3  ;;  %v4074_v39 = vor.u32 %v4510_v37, %v4073_v36  ;;  %v3802_v47 = vor.u32 %v4440_v4, %v3799_v8  ;;  %v3979_v36 = vld [vmem:[#allocation9 + $0xb8] sm:$0xf0]  ;;  %v4483_v4 = vld [vmem:[#allocation9 + $0xa4] sm:$0xf]  ;;  %v3971_v8 = vld [vmem:[#allocation9 + $0xa8] sm:$0xf0] }
 0x122   :  { %v1864_v32 = vadd.f32 %v1863_v25, %v1850_v20  ;;  %v4487_v25 = vld [vmem:[#allocation9 + $0xc4] sm:$0xf]  ;;  %v3982_v37 = vor.u32 %v4485_v35, %v3979_v36  ;;  %v4496_v48 = vld [vmem:[#allocation9 + $0x104] sm:$0xf0]  ;;  %v3955_v55 = vld [vmem:[#allocation9 + $0x88] sm:$0xf0] }
 0x123   :  { %2122 = vmatpush.bf16.msra.mxu3 %v3882_v44  ;;  %v3953_v44 = vld [vmem:[#allocation9 + $0x80] sm:$0xf]  ;;  %2564 = vmatpush.bf16.msra.mxu2 %v4074_v39  ;;  %v4025_v39 = vld [vmem:[#allocation9 + $0x110] sm:$0xf]  ;;  %v4507_v56 = vld [vmem:[#allocation9 + $0x164] sm:$0xf] }
 0x124   :  { %2593 = vmatpush.bf16.msra.mxu0 %v3942_v52  ;;  %v1878_v42 = vadd.f32 %v1877_v15, %v1864_v32  ;;  %v4480_v52 = vld [vmem:[#allocation9 + $0x84] sm:$0xf0]  ;;  %v1879_v61 = vpop.f32.mrf.mxu0  ;;  %v4041_v15 = vld [vmem:[#allocation9 + $0x130] sm:$0xf]  ;;  %v4505_v62 = vld [vmem:[#allocation9 + $0x154] sm:$0xf] }
 0x125   :  { %2552 = vmatpush.bf16.msra.mxu1 %v3994_v53  ;;  %v4065_v53 = vld [vmem:[#allocation9 + $0x160] sm:$0xf]  ;;  %v3954_v50 = vor.u32 %v4480_v52, %v3953_v44  ;;  %v4059_v12 = vld [vmem:[#allocation9 + $0x158] sm:$0xf0] }
 0x126   :  { %v4066_v57 = vor.u32 %v4508_v54, %v4065_v53  ;;  %v1893_v6 = vpop.f32.mrf.mxu1  ;;  %v4017_v44 = vld [vmem:[#allocation9 + $0x100] sm:$0xf]  ;;  %v4479_v54 = vld [vmem:[#allocation9 + $0x84] sm:$0xf] }
 0x127   :  { %2123 = vmatpush.bf16.msra.mxu3 %v3866_v58  ;;  %v1852_v58 = vadd.f32 %v1851_v7, %v1838_v22  ;;  %v4498_v22 = vld [vmem:[#allocation9 + $0x114] sm:$0xf0]  ;;  %v4018_v49 = vor.u32 %v4496_v48, %v4017_v44 }
 0x128   :  { %2594 = vmatpush.bf16.msra.mxu0 %v3934_v46  ;;  %v4491_v46 = vld [vmem:[#allocation9 + $0xe4] sm:$0xf]  ;;  %2565 = vmatpush.bf16.msra.mxu2 %v4066_v57  ;;  %v1907_v10 = vpop.f32.mrf.mxu2  ;;  %v4067_v57 = vld [vmem:[#allocation9 + $0x168] sm:$0xf0] }
 0x129   :  { %2553 = vmatpush.bf16.msra.mxu1 %v3986_v63  ;;  %v1865_v45 = vpop.f32.mrf.mxu3  ;;  %v1892_v63 = vadd.f32 %v1891_v27, %v1878_v42  ;;  %v3987_v27 = vld [vmem:[#allocation9 + $0xc8] sm:$0xf0]  ;;  %v4509_v42 = vld [vmem:[#allocation9 + $0x174] sm:$0xf] }
 0x12a   :  { %v1866_v23 = vadd.f32 %v1865_v45, %v1852_v58  ;;  %v3990_v32 = vor.u32 %v4487_v25, %v3987_v27  ;;  %v4070_v58 = vor.u32 %v4507_v56, %v4067_v57  ;;  %v4121_v56 = vld [vmem:[#allocation9 + $0x1d0] sm:$0xf]  ;;  %v4522_v57 = vld [vmem:[#allocation9 + $0x1d4] sm:$0xf0] }
 0x12b   :  { %2124 = vmatpush.bf16.msra.mxu3 %v3850_v1  ;;  %v4057_v1 = vld [vmem:[#allocation9 + $0x150] sm:$0xf]  ;;  %v1906_v5 = vadd.f32 %v1905_v41, %v1892_v63  ;;  %v4481_v41 = vld [vmem:[#allocation9 + $0x94] sm:$0xf]  ;;  %v4062_v63 = vor.u32 %v4505_v62, %v4059_v12  ;;  %v4518_v62 = vld [vmem:[#allocation9 + $0x1b4] sm:$0xf0] }
 0x12c   :  { %2595 = vmatpush.bf16.msra.mxu0 %v3926_v11  ;;  %v4058_v29 = vor.u32 %v4506_v2, %v4057_v1  ;;  %v1880_v7 = vadd.f32 %v1879_v61, %v1866_v23  ;;  %v4006_v11 = vor.u32 %v4491_v46, %v4003_v3  ;;  %v374_v46 = vperm.slane %v4853_v28, 2  ;;  %v4051_v3 = vld [vmem:[#allocation9 + $0x148] sm:$0xf0] }
 0x12d   :  { %2554 = vmatpush.bf16.msra.mxu1 %v3978_v19  ;;  %v4049_v19 = vld [vmem:[#allocation9 + $0x140] sm:$0xf]  ;;  %v2135_v21 = vmax.f32 %v1906_v5, 0.0 }
 0x12e   :  { %v1894_v20 = vadd.f32 %v1893_v6, %v1880_v7  ;;  %2566 = vmatpush.bf16.msra.mxu2 %v4058_v29  ;;  %v4050_v16 = vor.u32 %v4504_v13, %v4049_v19  ;;  %v4501_v6 = vld [vmem:[#allocation9 + $0x134] sm:$0xf]  ;;  %v4043_v29 = vld [vmem:[#allocation9 + $0x138] sm:$0xf0]  ;;  %v4035_v19 = vld [vmem:[#allocation9 + $0x128] sm:$0xf0] }
 0x12f   :  { %2125 = vmatpush.bf16.msra.mxu3 %v3834_v14  ;;  %v4489_v14 = vld [vmem:[#allocation9 + $0xd4] sm:$0xf] }
 0x130   :  { %2596 = vmatpush.bf16.msra.mxu0 %v3918_v24  ;;  %v1908_v18 = vadd.f32 %v1907_v10, %v1894_v20  ;;  %v4046_v10 = vor.u32 %v4501_v6, %v4043_v29  ;;  %v4512_v6 = vld [vmem:[#allocation9 + $0x184] sm:$0xf0] }
 0x131   :  { %2555 = vmatpush.bf16.msra.mxu1 %v3970_v26  ;;  %v4042_v26 = vor.u32 %v4502_v0, %v4041_v15 }
 0x132   :  { %v2139_v24 = vmax.f32 %v1908_v18, 0.0  ;;  %2567 = vmatpush.bf16.msra.mxu2 %v4050_v16  ;;  %v4027_v16 = vld [vmem:[#allocation9 + $0x118] sm:$0xf0]  ;;  %v4495_v18 = vld [vmem:[#allocation9 + $0x104] sm:$0xf] }
 0x133   :  { %2126 = vmatpush.bf16.msra.mxu3 %v3818_v34  ;;  %v4034_v34 = vor.u32 %v4500_v33, %v4033_v30 }
 0x134   :  { %2597 = vmatpush.bf16.msra.mxu0 %v3910_v40  ;;  %v2143_v31 = vpack.c.bf16 %v2139_v24, %v2135_v21  ;;  %v4026_v40 = vor.u32 %v4498_v22, %v4025_v39  ;;  %v4019_v21 = vld [vmem:[#allocation9 + $0x108] sm:$0xf0] }
 0x135   :  { %2556 = vmatpush.bf16.msra.mxu1 %v3962_v43  ;;  %v3963_v43 = vld [vmem:[#allocation9 + $0x98] sm:$0xf0] }
 0x136   :  { %2568 = vmatpush.bf16.msra.mxu2 %v4042_v26  ;;  %v3966_v53 = vor.u32 %v4481_v41, %v3963_v43  ;;  %v4022_v26 = vor.u32 %v4495_v18, %v4019_v21  ;;  %v4519_v21 = vld [vmem:[#allocation9 + $0x1c4] sm:$0xf] }
 0x137   :  { %2127 = vmatpush.bf16.msra.mxu3 %v3802_v47  ;;  %v4075_v47 = vld [vmem:[#allocation9 + $0x178] sm:$0xf0] }
 0x138   :  { %2598 = vmatpush.bf16.msra.mxu0 %v3902_v59  ;;  %v4078_v52 = vor.u32 %v4509_v42, %v4075_v47  ;;  %v3958_v59 = vor.u32 %v4479_v54, %v3955_v55  ;;  %v4137_v42 = vld [vmem:[#allocation9 + $0x1f0] sm:$0xf]  ;;  %v4526_v47 = vld [vmem:[#allocation9 + $0x1f4] sm:$0xf0]  ;;  %v4524_v54 = vld [vmem:[#allocation9 + $0x1e4] sm:$0xf0] }
 0x139   :  { %2557 = vmatpush.bf16.msra.mxu1 %v3954_v50 }
 0x13a   :  { %3886 = vmatmul.msk.bf16.vlgmr.msra.gmra.mxu3 %vm1669_vm1, %v4818_v51  ;;  %v3998_v51 = vor.u32 %v4489_v14, %v3995_v17  ;;  %2569 = vmatpush.bf16.msra.mxu2 %v4034_v34  ;;  %v4497_v14 = vld [vmem:[#allocation9 + $0x114] sm:$0xf] }
 0x13b   :  { %v4030_v0 = vor.u32 %v4497_v14, %v4027_v16  ;;  %v4521_v16 = vld [vmem:[#allocation9 + $0x1d4] sm:$0xf] }
 0x13c   :  { %2599 = vmatpush.bf16.msra.mxu0 %v3894_v9  ;;  %2558 = vmatmul.bf16.vlgmr.msra.gmra.mxu1 %v2143_v31  ;;  %v1947_v50 = vpop.f32.mrf.mxu0 }
 0x13d   :  { %2606 = vmatpush.bf16.msrb.mxu1 %v4014_v60  ;;  %v1961_v23 = vpop.f32.mrf.mxu1  ;;  %v4503_v60 = vld [vmem:[#allocation9 + $0x144] sm:$0xf] }
 0x13e   :  { %2570 = vmatpush.bf16.msra.mxu2 %v4026_v40  ;;  %v4054_v2 = vor.u32 %v4503_v60, %v4051_v3  ;;  %v4089_v60 = vld [vmem:[#allocation9 + $0x190] sm:$0xf]  ;;  %v4514_v3 = vld [vmem:[#allocation9 + $0x194] sm:$0xf0] }
 0x13f   :  { %2600 = vmatmul.bf16.vlgmr.msra.gmra.mxu0 %v4886_v38  ;;  %v3974_v38 = vor.u32 %v4483_v4, %v3971_v8 }
 0x140   :  { %v1919_v61 = vpop.f32.mrf.mxu2 }
 0x141   :  { %2607 = vmatpush.bf16.msrb.mxu1 %v4006_v11  ;;  %v1933_v45 = vpop.f32.mrf.mxu3  ;;  %v1920_v1 = vadd.f32 %v1919_v61, %v374_v46  ;;  %v4499_v11 = vld [vmem:[#allocation9 + $0x124] sm:$0xf] }
 0x142   :  { %2571 = vmatpush.bf16.msra.mxu2 %v4018_v49  ;;  %v4038_v28 = vor.u32 %v4499_v11, %v4035_v19 }
 0x143   :  { %v1934_v7 = vadd.f32 %v1933_v45, %v1920_v1  ;;  %v4520_v45 = vld [vmem:[#allocation9 + $0x1c4] sm:$0xf0]  ;;  %v4090_v1 = vor.u32 %v4514_v3, %v4089_v60 }
 0x144   :  { %v1949_v5 = vpop.f32.mrf.mxu0 }
 0x145   :  { %2608 = vmatpush.bf16.msrb.mxu1 %v3998_v51  ;;  %v1963_v20 = vpop.f32.mrf.mxu1  ;;  %v1948_v17 = vadd.f32 %v1947_v50, %v1934_v7  ;;  %v4105_v50 = vld [vmem:[#allocation9 + $0x1b0] sm:$0xf] }
 0x146   :  { %2620 = vmatpush.bf16.msrb.mxu2 %v4078_v52  ;;  %v4138_v52 = vor.u32 %v4526_v47, %v4137_v42  ;;  %v4106_v12 = vor.u32 %v4518_v62, %v4105_v50  ;;  %v4511_v42 = vld [vmem:[#allocation9 + $0x184] sm:$0xf]  ;;  %v4083_v47 = vld [vmem:[#allocation9 + $0x188] sm:$0xf0] }
 0x147   :  { %v1962_v24 = vadd.f32 %v1961_v23, %v1948_v17  ;;  %v4123_v17 = vld [vmem:[#allocation9 + $0x1d8] sm:$0xf0] }
 0x148   :  { %v1921_v13 = vpop.f32.mrf.mxu2  ;;  %2578 = vmatpush.bf16.msrb.mxu3 %v4138_v52  ;;  %v4086_v52 = vor.u32 %v4511_v42, %v4083_v47 }
 0x149   :  { %2609 = vmatpush.bf16.msrb.mxu1 %v3990_v32  ;;  %v1935_v9 = vpop.f32.mrf.mxu3  ;;  %v1922_v15 = vadd.f32 %v1921_v13, %v374_v46  ;;  %v4097_v46 = vld [vmem:[#allocation9 + $0x1a0] sm:$0xf]  ;;  %v4523_v13 = vld [vmem:[#allocation9 + $0x1e4] sm:$0xf] }
 0x14a   :  { %2621 = vmatpush.bf16.msrb.mxu2 %v4070_v58  ;;  %v4122_v58 = vor.u32 %v4522_v57, %v4121_v56 }
 0x14b   :  { %v1936_v51 = vadd.f32 %v1935_v9, %v1922_v15  ;;  %v4525_v9 = vld [vmem:[#allocation9 + $0x1f4] sm:$0xf]  ;;  %v4126_v15 = vor.u32 %v4521_v16, %v4123_v17 }
 0x14c   :  { %v4537_v16 = vld [vmem:[#allocation11 + $0x50] sm:$0xff] }
 0x14d   :  { %2610 = vmatpush.bf16.msrb.mxu1 %v3982_v37  ;;  %v1950_v32 = vadd.f32 %v1949_v5, %v1936_v51  ;;  %v4131_v5 = vld [vmem:[#allocation9 + $0x1e8] sm:$0xf0] }
 0x14e   :  { %2622 = vmatpush.bf16.msrb.mxu2 %v4062_v63  ;;  %v4516_v63 = vld [vmem:[#allocation9 + $0x1a4] sm:$0xf0] }
 0x14f   :  { %v1964_v35 = vadd.f32 %v1963_v20, %v1950_v32  ;;  %v4098_v23 = vor.u32 %v4516_v63, %v4097_v46  ;;  %v4134_v20 = vor.u32 %v4523_v13, %v4131_v5  ;;  %v4528_v13 = vld [vmem:[#allocation11 + $0x8] sm:$0xff] }
 0x150   :  { %v4540_v5 = vld [vmem:[#allocation11 + $0x68] sm:$0xff] }
 0x151   :  { %2611 = vmatpush.bf16.msrb.mxu1 %v3974_v38 }
 0x152   :  { %2623 = vmatpush.bf16.msrb.mxu2 %v4054_v2  ;;  %v4081_v2 = vld [vmem:[#allocation9 + $0x180] sm:$0xf] }
 0x153   :  { %v4082_v7 = vor.u32 %v4512_v6, %v4081_v2  ;;  %v4534_v2 = vld [vmem:[#allocation11 + $0x38] sm:$0xff]  ;;  %v4533_v6 = vld [vmem:[#allocation11 + $0x30] sm:$0xff] }
 0x154   :  { %2786 = vmatpush.bf16.msrb.mxu0 %v4534_v2 }
 0x155   :  { %2612 = vmatpush.bf16.msrb.mxu1 %v3966_v53  ;;  %v4129_v53 = vld [vmem:[#allocation9 + $0x1e0] sm:$0xf] }
 0x156   :  { %2624 = vmatpush.bf16.msrb.mxu2 %v4046_v10  ;;  %v4130_v55 = vor.u32 %v4524_v54, %v4129_v53  ;;  %v4139_v10 = vld [vmem:[#allocation9 + $0x1f8] sm:$0xf0] }
 0x157   :  { %v4142_v11 = vor.u32 %v4525_v9, %v4139_v10  ;;  %v4530_v9 = vld [vmem:[#allocation11 + $0x18] sm:$0xff] }
 0x158   :  { %2579 = vmatpush.bf16.msrb.mxu3 %v4130_v55  ;;  %2787 = vmatpush.bf16.msrb.mxu0 %v4533_v6  ;;  %v4542_v10 = vld [vmem:[#allocation11 + $0x78] sm:$0xff] }
 0x159   :  { %2613 = vmatpush.bf16.msrb.mxu1 %v3958_v59  ;;  %v4113_v59 = vld [vmem:[#allocation9 + $0x1c0] sm:$0xf] }
 0x15a   :  { %2625 = vmatpush.bf16.msrb.mxu2 %v4038_v28  ;;  %v4114_v61 = vor.u32 %v4520_v45, %v4113_v59 }
 0x15c   :  { %2614 = vmatmul.bf16.vlgmr.msrb.gmra.mxu1 %v2143_v31  ;;  %v2003_v30 = vpop.f32.mrf.mxu0  ;;  %v2017_v31 = vpop.f32.mrf.mxu1  ;;  %2580 = vmatpush.bf16.msrb.mxu3 %v4122_v58 }
 0x15d   :  { %2800 = vmatpush.bf16.msra.mxu1 %v4542_v10 }
 0x15e   :  { %2626 = vmatpush.bf16.msrb.mxu2 %v4030_v0  ;;  %v4560_v0 = vld [vmem:[#allocation8] sm:$0xf] }
 0x15f   :  { %v375_v18 = vperm.slane %v4560_v0, 3 }
 0x160   :  { %v1975_v27 = vpop.f32.mrf.mxu2  ;;  %2581 = vmatpush.bf16.msrb.mxu3 %v4114_v61 }
 0x161   :  { %v1989_v25 = vpop.f32.mrf.mxu3  ;;  %v1976_v33 = vadd.f32 %v1975_v27, %v1962_v24  ;;  %v4115_v24 = vld [vmem:[#allocation9 + $0x1c8] sm:$0xf0] }
 0x162   :  { %2627 = vmatpush.bf16.msrb.mxu2 %v4022_v26 }
 0x163   :  { %v1990_v34 = vadd.f32 %v1989_v25, %v1976_v33  ;;  %v4118_v25 = vor.u32 %v4519_v21, %v4115_v24  ;;  %v4107_v33 = vld [vmem:[#allocation9 + $0x1b8] sm:$0xf0]  ;;  %v2210_v21 = vld [vmem:[%s4912_s4] sm:$0x3]  ;;  %v4535_v24 = vld [vmem:[#allocation11 + $0x40] sm:$0xff] }
 0x164   :  { %v2005_v39 = vpop.f32.mrf.mxu0  ;;  %v2019_v40 = vpop.f32.mrf.mxu1  ;;  %2582 = vmatpush.bf16.msrb.mxu3 %v4106_v12 }
 0x165   :  { %v2004_v4 = vadd.f32 %v2003_v30, %v1990_v34  ;;  %v4517_v30 = vld [vmem:[#allocation9 + $0x1b4] sm:$0xf]  ;;  %v4515_v34 = vld [vmem:[#allocation9 + $0x1a4] sm:$0xf] }
 0x166   :  { %v4110_v32 = vor.u32 %v4517_v30, %v4107_v33 }
 0x167   :  { %v2018_v38 = vadd.f32 %v2017_v31, %v2004_v4  ;;  %v4513_v4 = vld [vmem:[#allocation9 + $0x194] sm:$0xf] }
 0x168   :  { %v1977_v36 = vpop.f32.mrf.mxu2  ;;  %2583 = vmatpush.bf16.msrb.mxu3 %v4098_v23 }
 0x169   :  { %v1991_v37 = vpop.f32.mrf.mxu3  ;;  %v1978_v8 = vadd.f32 %v1977_v36, %v1964_v35  ;;  %v2136_v44 = vmax.f32 %v2018_v38, 0.0  ;;  %v4099_v35 = vld [vmem:[#allocation9 + $0x1a8] sm:$0xf0] }
 0x16a   :  { %v4102_v36 = vor.u32 %v4515_v34, %v4099_v35 }
 0x16b   :  { %v1992_v22 = vadd.f32 %v1991_v37, %v1978_v8  ;;  %v4091_v8 = vld [vmem:[#allocation9 + $0x198] sm:$0xf0] }
 0x16c   :  { %2584 = vmatpush.bf16.msrb.mxu3 %v4090_v1  ;;  %v4094_v38 = vor.u32 %v4513_v4, %v4091_v8 }
 0x16d   :  { %v2006_v41 = vadd.f32 %v2005_v39, %v1992_v22 }
 0x16f   :  { %v2020_v43 = vadd.f32 %v2019_v40, %v2006_v41 }
 0x170   :  { %2585 = vmatpush.bf16.msrb.mxu3 %v4082_v7  ;;  %v4531_v7 = vld [vmem:[#allocation11 + $0x20] sm:$0xff] }
 0x171   :  { %v2140_v48 = vmax.f32 %v2020_v43, 0.0 }
 0x173   :  { %v2144_v49 = vpack.c.bf16 %v2140_v48, %v2136_v44 }
 0x174   :  { %2634 = vmatpush.bf16.msra.mxu3 %v4142_v11  ;;  %v4529_v11 = vld [vmem:[#allocation11 + $0x10] sm:$0xff] }
 0x175   :  { %2572 = vmatmul.bf16.vlgmr.msra.gmra.mxu2 %v2144_v49 }
 0x178   :  { %2635 = vmatpush.bf16.msra.mxu3 %v4134_v20  ;;  %v4539_v20 = vld [vmem:[#allocation11 + $0x60] sm:$0xff] }
 0x179   :  { %v2031_v19 = vpop.f32.mrf.mxu1 }
 0x17a   :  { %v2032_v27 = vadd.f32 %v2031_v19, %v375_v18  ;;  %v4541_v19 = vld [vmem:[#allocation11 + $0x70] sm:$0xff] }
 0x17b   :  { %2801 = vmatpush.bf16.msra.mxu1 %v4541_v19  ;;  %v2816_v19 = vld [vmem:[%s4915_s7] sm:$0x1] }
 0x17c   :  { %2636 = vmatpush.bf16.msra.mxu3 %v4126_v15  ;;  %v2073_v22 = vpop.f32.mrf.mxu0 }
 0x17f   :  { %2802 = vmatpush.bf16.msra.mxu1 %v4540_v5 }
 0x180   :  { %v2045_v28 = vpop.f32.mrf.mxu2  ;;  %2637 = vmatpush.bf16.msra.mxu3 %v4118_v25 }
 0x181   :  { %v2059_v29 = vpop.f32.mrf.mxu3  ;;  %v2033_v51 = vpop.f32.mrf.mxu1  ;;  %v2046_v37 = vadd.f32 %v2045_v28, %v2032_v27  ;;  %v4527_v28 = vld [vmem:[#allocation11] sm:$0xff] }
 0x182   :  { %v2034_v39 = vadd.f32 %v2033_v51, %v375_v18  ;;  %v4536_v18 = vld [vmem:[#allocation11 + $0x48] sm:$0xff]  ;;  %v2212_v51 = vperm.slane %v2210_v21, 0 }
 0x183   :  { %v2060_v41 = vadd.f32 %v2059_v29, %v2046_v37  ;;  %v4532_v29 = vld [vmem:[#allocation11 + $0x28] sm:$0xff]  ;;  %2803 = vmatpush.bf16.msra.mxu1 %v4539_v20 }
 0x184   :  { %2638 = vmatpush.bf16.msra.mxu3 %v4110_v32  ;;  %v2075_v55 = vpop.f32.mrf.mxu0  ;;  %2788 = vmatpush.bf16.msrb.mxu0 %v4532_v29 }
 0x185   :  { %2628 = vmatmul.bf16.vlgmr.msrb.gmra.mxu2 %v2144_v49  ;;  %v2074_v49 = vadd.f32 %v2073_v22, %v2060_v41 }
 0x188   :  { %v2047_v26 = vpop.f32.mrf.mxu2  ;;  %2639 = vmatpush.bf16.msra.mxu3 %v4102_v36  ;;  %2789 = vmatpush.bf16.msrb.mxu0 %v4531_v7 }
 0x189   :  { %v2061_v14 = vpop.f32.mrf.mxu3  ;;  %v2048_v44 = vadd.f32 %v2047_v26, %v2034_v39 }
 0x18b   :  { %v2062_v53 = vadd.f32 %v2061_v14, %v2048_v44  ;;  %v4538_v14 = vld [vmem:[#allocation11 + $0x58] sm:$0xff] }
 0x18c   :  { %2640 = vmatpush.bf16.msra.mxu3 %v4094_v38  ;;  %2790 = vmatpush.bf16.msrb.mxu0 %v4530_v9 }
 0x18d   :  { %v2076_v57 = vadd.f32 %v2075_v55, %v2062_v53  ;;  %2804 = vmatpush.bf16.msra.mxu1 %v4538_v14 }
 0x190   :  { %2641 = vmatpush.bf16.msra.mxu3 %v4086_v52  ;;  %2791 = vmatpush.bf16.msrb.mxu0 %v4529_v11 }
 0x191   :  { %2805 = vmatpush.bf16.msra.mxu1 %v4537_v16 }
 0x194   :  { %2792 = vmatpush.bf16.msrb.mxu0 %v4528_v13 }
 0x195   :  { %2806 = vmatpush.bf16.msra.mxu1 %v4536_v18 }
 0x198   :  { %2793 = vmatpush.bf16.msrb.mxu0 %v4527_v28 }
 0x199   :  { %v2087_v40 = vpop.f32.mrf.mxu1  ;;  %2807 = vmatpush.bf16.msra.mxu1 %v4535_v24 }
 0x19a   :  { %v2088_v54 = vadd.f32 %v2087_v40, %v2074_v49 }
 0x19c   :  { %v2545_v17 = vpop.f32.mrf.mxu0 }
 0x19d   :  { %v2546_v33 = vadd.f32 %v2545_v17, %v2212_v51 }
 0x1a0   :  { %v2101_v43 = vpop.f32.mrf.mxu2 }
 0x1a1   :  { %v2115_v31 = vpop.f32.mrf.mxu3  ;;  %v2089_v56 = vpop.f32.mrf.mxu1  ;;  %v2102_v45 = vadd.f32 %v2101_v43, %v2088_v54  ;;  %v2213_v43 = vperm.slane %v2210_v21, 1 }
 0x1a2   :  { %v2090_v61 = vadd.f32 %v2089_v56, %v2076_v57 }
 0x1a3   :  { %v2116_v62 = vadd.f32 %v2115_v31, %v2102_v45 }
 0x1a4   :  { %v2547_v25 = vpop.f32.mrf.mxu0 }
 0x1a5   :  { %v2548_v31 = vadd.f32 %v2547_v25, %v2212_v51 }
 0x1a8   :  { %v2103_v58 = vpop.f32.mrf.mxu2 }
 0x1a9   :  { %v2117_v48 = vpop.f32.mrf.mxu3  ;;  %v2104_v50 = vadd.f32 %v2103_v58, %v2090_v61 }
 0x1ab   :  { %v2118_v12 = vadd.f32 %v2117_v48, %v2104_v50 }
 0x1b9   :  { %v2559_v15 = vpop.f32.mrf.mxu1 }
 0x1ba   :  { %v2560_v32 = vadd.f32 %v2559_v15, %v2546_v33 }
 0x1bc   :  { %v2601_v36 = vpop.f32.mrf.mxu0 }
 0x1bd   :  { %v2129_v59 = vpop.f32.mrf.mxu3  ;;  %v2602_v42 = vadd.f32 %v2601_v36, %v2213_v43 }
 0x1be   :  { %v2130_v46 = vadd.f32 %v2129_v59, %v2116_v62 }
 0x1c0   :  { %v2137_v60 = vmax.f32 %v2130_v46, 0.0  ;;  %v4726_v46 = vmov 0  }
 0x1c1   :  { %v2561_v26 = vpop.f32.mrf.mxu1  ;;  %4558 = vset.pattern.permute.xlu0 %v4726_v46 }
 0x1c2   :  { %v2562_v34 = vadd.f32 %v2561_v26, %v2548_v31 }
 0x1c4   :  { %v2603_v48 = vpop.f32.mrf.mxu0 }
 0x1c5   :  { %v2131_v63 = vpop.f32.mrf.mxu3  ;;  %v2604_v52 = vadd.f32 %v2603_v48, %v2213_v43 }
 0x1c6   :  { %v2132_v23 = vadd.f32 %v2131_v63, %v2118_v12  ;;  %v2818_v12 = vld [vmem:[#allocation2] sm:$0x1] }
 0x1c7   :  { %2821 = vperm.xlu0 %4558, %v2818_v12  }
 0x1c8   :  { %v2141_v3 = vmax.f32 %v2132_v23, 0.0 }
 0x1ca   :  { %v2145_v1 = vpack.c.bf16 %v2141_v3, %v2137_v60  ;;  %v4559_v60 = vld [vmem:[%s4914_s6] ss:$0 sm:$0xff] }
 0x1cc   :  { %2586 = vmatmul.bf16.vlgmr.msrb.gmra.mxu3 %v2145_v1 }
 0x1d9   :  { %v2615_v8 = vpop.f32.mrf.mxu1 }
 0x1da   :  { %v2616_v53 = vadd.f32 %v2615_v8, %v2602_v42 }
 0x1dc   :  { %2642 = vmatmul.bf16.vlgmr.msra.gmra.mxu3 %v2145_v1 }
 0x1e1   :  { %v2617_v47 = vpop.f32.mrf.mxu1 }
 0x1e2   :  { %v2618_v55 = vadd.f32 %v2617_v47, %v2604_v52 }
 0x1f8   :  { %v2573_v0 = vpop.f32.mrf.mxu2 }
 0x1f9   :  { %v2574_v35 = vadd.f32 %v2573_v0, %v2560_v32 }
 0x200   :  { %v2575_v27 = vpop.f32.mrf.mxu2 }
 0x201   :  { %v2576_v37 = vadd.f32 %v2575_v27, %v2562_v34 }
 0x208   :  { %v2629_v40 = vpop.f32.mrf.mxu2 }
 0x209   :  { %v2630_v56 = vadd.f32 %v2629_v40, %v2616_v53 }
 0x210   :  { %v2631_v54 = vpop.f32.mrf.mxu2 }
 0x211   :  { %v2632_v57 = vadd.f32 %v2631_v54, %v2618_v55 }
 0x239   :  { %v2822_v13 = vpop.permute.xlu0 %2821 }
 0x23a   :  { %v2824_v5 = vperm.slane %v2822_v13, 0 }
 0x24f   :  { %v2587_v30 = vpop.f32.mrf.mxu3 }
 0x250   :  { %v2588_v4 = vadd.f32 %v2587_v30, %v2574_v35 }
 0x252   :  { %v2648_v38 = vmax.f32 %v2588_v4, 0.0 }
 0x257   :  { %v2589_v39 = vpop.f32.mrf.mxu3 }
 0x258   :  { %v2590_v22 = vadd.f32 %v2589_v39, %v2576_v37 }
 0x25a   :  { %v2650_v41 = vmax.f32 %v2590_v22, 0.0 }
 0x25c   :  { %v2652_v44 = vpack.c.bf16 %v2650_v41, %v2648_v38 }
 0x25e   :  { %2794 = vmatmul.bf16.vlgmr.msrb.gmra.mxu0 %v2652_v44 }
 0x25f   :  { %v2643_v49 = vpop.f32.mrf.mxu3 }
 0x260   :  { %v2644_v58 = vadd.f32 %v2643_v49, %v2630_v56 }
 0x262   :  { %v2649_v61 = vmax.f32 %v2644_v58, 0.0 }
 0x267   :  { %v2645_v59 = vpop.f32.mrf.mxu3 }
 0x268   :  { %v2646_v45 = vadd.f32 %v2645_v59, %v2632_v57 }
 0x26a   :  { %v2651_v50 = vmax.f32 %v2646_v45, 0.0 }
 0x26c   :  { %v2653_v62 = vpack.c.bf16 %v2651_v50, %v2649_v61 }
 0x26e   :  { %2808 = vmatmul.bf16.vlgmr.msra.gmra.mxu1 %v2653_v62 }
 0x2db   :  { %v2795_v63 = vpop.f32.mrf.mxu0 }
 0x2dc   :  { %v2796_v1 = vadd.f32 %v4559_v60, %v2795_v63 }
 0x2e3   :  { %v2797_v3 = vpop.f32.mrf.mxu0 }
 0x2e4   :  { %v2798_v2 = vadd.f32 %v4559_v60, %v2797_v3 }
 0x2eb   :  { %v2809_v23 = vpop.f32.mrf.mxu1 }
 0x2ec   :  { %v2810_v6 = vadd.f32 %v2809_v23, %v2796_v1 }
 0x2ee   :  { %v2814_v9 = vmax.f32 %v2810_v6, 0.0 }
 0x2f3   :  { %v2811_v29 = vpop.f32.mrf.mxu1 }
 0x2f4   :  { %v2812_v7 = vadd.f32 %v2811_v29, %v2798_v2 }
 0x2f6   :  { %v2815_v10 = vmax.f32 %v2812_v7, 0.0 }
 0x2f8   :  { %v2817_v11 = vpack.c.bf16 %v2815_v10, %v2814_v9 }
 0x2fa   :  { %2832 = vmatpush.bf16.xpose.msra.mxu2 %v2817_v11 }
 0x301   :  { %2833 = vmatmul.bf16.vlgmr.msra.gmra.mxu2 %v2816_v19 }
 0x384   :  { %v2834_v28 = vpop.f32.mrf.mxu2 }
 0x385   :  { %v2835_v20 = vadd.f32 %v2834_v28, %v2824_v5 }
 0x387   :  { %2839 = vst.msk [vmem:[#allocation12] sm:$0x1] %vm2838_vm2, %v2835_v20 }
 0x388   :  { %2850 = dma.vmem_to_hbm [thread:$0]  %s2846_s22, 16, %s2848_s1, [#allocation5]  }
 0x38c   :  { %v2836_v14 = vpop.f32.mrf.mxu2 }
 0x38d   :  { %4711 = dma.done.wait [#allocation5], 16  }
 0x38e   :  { %4712 = vsyncadd [#allocation5], 4294967280 }
 0x38f   :  { %2855 = vsyncpa [#allocation4], 1 }
 0x390   :  { %2856 = vsyncpa [#allocation7], 1 }
 0x391   :  { %2857 = vsyncpa [#allocation10], 1 }
 0x392   :  { %2858 = vsyncpa [#allocation5], 1 }

</bundles_post_ra>
